<compile_context>
chip_gen: v6e
topology: v6e:2x2x1
jax: 0.10.0
libtpu: 0.0.40
codegen_flags: <defaults>
</compile_context>

<pallas_src>
import jax
import jax.numpy as jnp
from jax.experimental import pallas as pl
from jax.experimental.pallas import tpu as pltpu


def _conv_pool_kernel(
    x_ref,            # (1, 3, tile_N)  f32   points for one (batch, tile)
    w1_ref, b1_ref,   # (64, 3)   f32,  (64, 1)   f32
    w2_ref, b2_ref,   # (128, 64) bf16, (128, 1)  f32
    w3_ref, b3_ref,   # (1024,128)bf16, (1, 1024) f32  (lane-dense row)
    o_ref,            # (1, 1, 1024) f32  pooled (max) features, lane-dense
    maxacc_ref,       # (1024, 128) f32 running max (pre-bias, pre-ReLU)
):
    n = pl.program_id(1)

    @pl.when(n == 0)
    def _():
        maxacc_ref[...] = jnp.full(maxacc_ref.shape, -jnp.inf, dtype=jnp.float32)

    x = x_ref[0]                     # (3, tile_N) f32, points on lanes
    w1 = w1_ref[...]                 # (64, 3) f32

    # Conv1d(3, 64, 1) + ReLU: cin=3 -> 3 VPU broadcast FMAs (keep MXU free).
    h = (w1[:, 0:1] * x[0:1, :]
         + w1[:, 1:2] * x[1:2, :]
         + w1[:, 2:3] * x[2:3, :]) + b1_ref[...]
    h = jnp.maximum(h, 0.0).astype(jnp.bfloat16)       # (64, tile_N) bf16

    # Conv1d(64, 128, 1) + ReLU on the MXU: bf16 inputs, f32 accumulation.
    h = jnp.dot(w2_ref[...], h,
                preferred_element_type=jnp.float32) + b2_ref[...]
    h = jnp.maximum(h, 0.0).astype(jnp.bfloat16)       # (128, tile_N) bf16

    # Conv1d(128, 1024, 1): bias + ReLU are deferred past the max-pool.
    # Chunk over output channels so the peak intermediate is (256, tile_N).
    tile_n = x.shape[1]
    lane_w = maxacc_ref.shape[1]          # 128
    n_lane = tile_n // lane_w
    cchunk = 256
    for c in range(maxacc_ref.shape[0] // cchunk):
        w3c = w3_ref[c * cchunk:(c + 1) * cchunk, :]                 # (256, 128)
        p = jnp.dot(w3c, h, preferred_element_type=jnp.float32)      # (256, tile_N)

        # Tree-max the lane chunks of this tile down to one (256, 128) block.
        parts = [p[:, j * lane_w:(j + 1) * lane_w] for j in range(n_lane)]
        while len(parts) > 1:
            nxt = [jnp.maximum(parts[i], parts[i + 1])
                   for i in range(0, len(parts) - 1, 2)]
            if len(parts) % 2:
                nxt.append(parts[-1])
            parts = nxt
        tmax = parts[0]                                              # (256, 128)

        # Single read-modify-write of the running max for this channel chunk.
        sl = slice(c * cchunk, (c + 1) * cchunk)
        maxacc_ref[sl, :] = jnp.maximum(maxacc_ref[sl, :], tmax)

    # torch.max(x, 2) + deferred conv3 bias/ReLU, stored lane-dense.
    @pl.when(n == pl.num_programs(1) - 1)
    def _():
        acc_t = maxacc_ref[...].T                          # (128, 1024) XLU xpose
        pooled = jnp.max(acc_t, axis=0, keepdims=True)     # (1, 1024) sublane red.
        o_ref[0] = jnp.maximum(pooled + b3_ref[...], 0.0)  # relu(max + b3)


def _fc_kernel(
    g_ref,              # (B, 1024) f32 pooled features
    wf1_ref, bf1_ref,   # (1024, 512) bf16, (1, 512) f32
    wf2_ref, bf2_ref,   # (512, 256)  bf16, (1, 256) f32
    wf3_ref, bf3_ref,   # (256, 9)    f32,  (1, 9)   f32  (identity pre-folded)
    o_ref,              # (B, 9) f32
):
    f = jnp.dot(g_ref[...].astype(jnp.bfloat16), wf1_ref[...],
                preferred_element_type=jnp.float32) + bf1_ref[...]
    f = jnp.maximum(f, 0.0)
    f = jnp.dot(f.astype(jnp.bfloat16), wf2_ref[...],
                preferred_element_type=jnp.float32) + bf2_ref[...]
    f = jnp.maximum(f, 0.0)
    o_ref[...] = jnp.dot(f, wf3_ref[...],
                         preferred_element_type=jnp.float32) + bf3_ref[...]


def point_matrix_net(x, params):
    """x: (B, 3, N) float32 — same channels-first layout the Conv1d expects."""
    B, C, N = x.shape
    assert C == 3
    (w1, b1, w2, b2, w3, b3, wf1, bf1, wf2, bf2, wf3, bf3) = params

    # bf16 weights for the MXU-heavy layers; f32 elsewhere.
    w2 = w2.astype(jnp.bfloat16)
    w3 = w3.astype(jnp.bfloat16)
    wf1 = wf1.astype(jnp.bfloat16)
    wf2 = wf2.astype(jnp.bfloat16)

    # Pad the points axis to a multiple of 128 by replicating the last point.
    # Duplicate points cannot change a max, so this is exact.
    pad = (-N) % 128
    if pad:
        x = jnp.concatenate(
            [x, jnp.broadcast_to(x[:, :, -1:], (B, 3, pad))], axis=2)
    n_pad = N + pad

    # Largest lane-aligned tile that divides the padded N (cap at 2048 so the
    # working set stays comfortably inside v7x's 64 MiB VMEM).
    tile_n = 128
    for t in (2048, 1024, 512, 256, 128):
        if n_pad % t == 0:
            tile_n = t
            break
    n_tiles = n_pad // tile_n

    # conv3 bias as a lane-dense row, applied after the max-pool.
    b3_row = b3.reshape(1, 1024)

    # Explicit scoped-VMEM budget (kernel working set is well below this at
    # tile_n=2048; keep under v7x's 64 MiB physical VMEM).
    vmem_limit = (48 << 20) if tile_n >= 1024 else (32 << 20)

    const = lambda a: pl.BlockSpec(a.shape, lambda b, n, _nd=a.ndim: (0,) * _nd)

    pooled = pl.pallas_call(
        _conv_pool_kernel,
        out_shape=jax.ShapeDtypeStruct((B, 1, 1024), jnp.float32),
        grid_spec=pltpu.PrefetchScalarGridSpec(
            num_scalar_prefetch=0,
            grid=(B, n_tiles),
            in_specs=[
                pl.BlockSpec((1, 3, tile_n), lambda b, n: (b, 0, n)),
                const(w1), const(b1),
                const(w2), const(b2),
                const(w3), const(b3_row),
            ],
            out_specs=pl.BlockSpec((1, 1, 1024), lambda b, n: (b, 0, 0)),
            scratch_shapes=[pltpu.VMEM((1024, 128), jnp.float32)],
        ),
        compiler_params=pltpu.CompilerParams(
            dimension_semantics=("parallel", "arbitrary"),
            vmem_limit_bytes=vmem_limit,
        ),
    )(x, w1, b1, w2, b2, w3, b3_row)

    g = pooled.reshape(B, 1024)          # free squeeze in XLA (lane-dense)

    # Fold the flattened 3x3 identity into the fc3 bias on the host.
    iden = jnp.array([1, 0, 0, 0, 1, 0, 0, 0, 1], jnp.float32).reshape(1, 9)
    out9 = pl.pallas_call(
        _fc_kernel,
        out_shape=jax.ShapeDtypeStruct((B, 9), jnp.float32),
    )(g, wf1, bf1, wf2, bf2, wf3, bf3 + iden)

    return out9.reshape(B, 3, 3)


def init_params(key):
    """Synthetic parameters in kernel layouts.

    Conv1d(cin, cout, 1) weight (cout, cin, 1) -> (cout, cin); biases -> (cout, 1).
    Linear(fin, fout) weight (fout, fin) -> stored transposed (fin, fout); biases (1, fout).
    Scales ~1/sqrt(fan_in) so activations stay O(1) (meaningful correctness check).
    """
    keys = jax.random.split(key, 12)

    def w(k, shape, fan_in):
        return jax.random.normal(k, shape, dtype=jnp.float32) / jnp.sqrt(fan_in)

    def b(k, shape):
        return 0.1 * jax.random.normal(k, shape, dtype=jnp.float32)

    w1, b1 = w(keys[0], (64, 3), 3.0), b(keys[1], (64, 1))
    w2, b2 = w(keys[2], (128, 64), 64.0), b(keys[3], (128, 1))
    w3, b3 = w(keys[4], (1024, 128), 128.0), b(keys[5], (1024, 1))
    wf1, bf1 = w(keys[6], (1024, 512), 1024.0), b(keys[7], (1, 512))
    wf2, bf2 = w(keys[8], (512, 256), 512.0), b(keys[9], (1, 256))
    wf3, bf3 = w(keys[10], (256, 9), 256.0), b(keys[11], (1, 9))
    return (w1, b1, w2, b2, w3, b3, wf1, bf1, wf2, bf2, wf3, bf3)


def reference_forward(x, params):
    """Plain-JAX f32 reference mirroring the PyTorch forward."""
    (w1, b1, w2, b2, w3, b3, wf1, bf1, wf2, bf2, wf3, bf3) = params
    B = x.shape[0]
    h = jax.nn.relu(jnp.einsum('oi,bin->bon', w1, x) + b1[None])   # (B, 64, N)
    h = jax.nn.relu(jnp.einsum('oi,bin->bon', w2, h) + b2[None])   # (B, 128, N)
    h = jax.nn.relu(jnp.einsum('oi,bin->bon', w3, h) + b3[None])   # (B, 1024, N)
    g = jnp.max(h, axis=2)                                         # (B, 1024)
    f = jax.nn.relu(g @ wf1 + bf1)
    f = jax.nn.relu(f @ wf2 + bf2)
    f = f @ wf3 + bf3
    iden = jnp.array([1, 0, 0, 0, 1, 0, 0, 0, 1], jnp.float32)[None, :]
    return (f + iden).reshape(B, 3, 3)


if __name__ == "__main__":
    key = jax.random.PRNGKey(0)
    k_x, k_p = jax.random.split(key)

    B, N = 2, 16                       # small demo shapes: batch=2, 16 points
    x = jax.random.normal(k_x, (B, 3, N), dtype=jnp.float32)
    params = init_params(k_p)

    out = jax.block_until_ready(point_matrix_net(x, params))
    ref = reference_forward(x, params)

    assert out.shape == (B, 3, 3)
    # bf16 MXU inputs (f32 accumulation) vs pure-f32 reference: allow ~1e-2.
    max_err = float(jnp.max(jnp.abs(out - ref)))
    assert jnp.allclose(out, ref, atol=5e-2, rtol=5e-2), max_err

    print("KERNEL_OK")
</pallas_src>

<mosaic_0001>
module attributes {stable_mosaic.version = 11 : i64} {
  func.func @_conv_pool_kernel(%arg0: i32, %arg1: i32, %arg2: memref<1x3x128xf32, #tpu.memory_space<vmem>>, %arg3: memref<64x3xf32, #tpu.memory_space<vmem>>, %arg4: memref<64x1xf32, #tpu.memory_space<vmem>>, %arg5: memref<128x64xbf16, #tpu.memory_space<vmem>>, %arg6: memref<128x1xf32, #tpu.memory_space<vmem>>, %arg7: memref<1024x128xbf16, #tpu.memory_space<vmem>>, %arg8: memref<1x1024xf32, #tpu.memory_space<vmem>>, %arg9: memref<1x1x1024xf32, #tpu.memory_space<vmem>>, %arg10: memref<1024x128xf32, #tpu.memory_space<vmem>>) attributes {dimension_semantics = [#tpu.dimension_semantics<parallel>, #tpu.dimension_semantics<arbitrary>], iteration_bounds = array<i64: 2, 1>, scalar_prefetch = 0 : i64, scratch_operands = 1 : i64, tpu.core_type = #tpu.core_type<tc>, window_params = [{transform_indices = @transform_0, window_bounds = array<i64: 1, 3, 128>}, {pipeline_mode = #tpu.pipeline_mode<synchronous>, transform_indices = @transform_1, window_bounds = array<i64: 64, 3>}, {pipeline_mode = #tpu.pipeline_mode<synchronous>, transform_indices = @transform_2, window_bounds = array<i64: 64, 1>}, {pipeline_mode = #tpu.pipeline_mode<synchronous>, transform_indices = @transform_3, window_bounds = array<i64: 128, 64>}, {pipeline_mode = #tpu.pipeline_mode<synchronous>, transform_indices = @transform_4, window_bounds = array<i64: 128, 1>}, {pipeline_mode = #tpu.pipeline_mode<synchronous>, transform_indices = @transform_5, window_bounds = array<i64: 1024, 128>}, {pipeline_mode = #tpu.pipeline_mode<synchronous>, transform_indices = @transform_6, window_bounds = array<i64: 1, 1024>}, {transform_indices = @transform_7, window_bounds = array<i64: 1, 1, 1024>}]} {
    %c0_i32 = arith.constant 0 : i32
    %0 = arith.cmpi eq, %arg1, %c0_i32 : i32
    %1 = arith.extui %0 : i1 to i32
    %c0_i32_0 = arith.constant 0 : i32
    %2 = arith.cmpi ne, %1, %c0_i32_0 : i32
    scf.if %2 {
      %cst_40 = arith.constant 0xFF800000 : f32
      %60 = vector.broadcast %cst_40 : f32 to vector<1024x128xf32>
      %c0_41 = arith.constant 0 : index
      %c0_42 = arith.constant 0 : index
      %61 = vector.load %arg10[%c0_41, %c0_42] : memref<1024x128xf32, #tpu.memory_space<vmem>>, vector<1024x128xf32>
      tpu.vector_store %arg10[%c0_41, %c0_42], %60 {strides = array<i32>} : memref<1024x128xf32, #tpu.memory_space<vmem>>, vector<1024x128xf32>,
    } else {
    }
    %c0 = arith.constant 0 : index
    %c0_1 = arith.constant 0 : index
    %c0_2 = arith.constant 0 : index
    %3 = vector.load %arg2[%c0, %c0_1, %c0_2] : memref<1x3x128xf32, #tpu.memory_space<vmem>>, vector<1x3x128xf32>
    %4 = vector.shape_cast %3 : vector<1x3x128xf32> to vector<3x128xf32>
    %c0_3 = arith.constant 0 : index
    %c0_4 = arith.constant 0 : index
    %5 = vector.load %arg3[%c0_3, %c0_4] : memref<64x3xf32, #tpu.memory_space<vmem>>, vector<64x3xf32>
    %6 = vector.extract_strided_slice %5 {offsets = [0, 0], sizes = [64, 1], strides = [1, 1]} : vector<64x3xf32> to vector<64x1xf32>
    %7 = vector.extract_strided_slice %4 {offsets = [0, 0], sizes = [1, 128], strides = [1, 1]} : vector<3x128xf32> to vector<1x128xf32>
    %8 = vector.broadcast %6 : vector<64x1xf32> to vector<64x128xf32>
    %9 = vector.broadcast %7 : vector<1x128xf32> to vector<64x128xf32>
    %10 = arith.mulf %8, %9 : vector<64x128xf32>
    %11 = vector.extract_strided_slice %5 {offsets = [0, 1], sizes = [64, 1], strides = [1, 1]} : vector<64x3xf32> to vector<64x1xf32>
    %12 = vector.extract_strided_slice %4 {offsets = [1, 0], sizes = [1, 128], strides = [1, 1]} : vector<3x128xf32> to vector<1x128xf32>
    %13 = vector.broadcast %11 : vector<64x1xf32> to vector<64x128xf32>
    %14 = vector.broadcast %12 : vector<1x128xf32> to vector<64x128xf32>
    %15 = arith.mulf %13, %14 : vector<64x128xf32>
    %16 = arith.addf %10, %15 : vector<64x128xf32>
    %17 = vector.extract_strided_slice %5 {offsets = [0, 2], sizes = [64, 1], strides = [1, 1]} : vector<64x3xf32> to vector<64x1xf32>
    %18 = vector.extract_strided_slice %4 {offsets = [2, 0], sizes = [1, 128], strides = [1, 1]} : vector<3x128xf32> to vector<1x128xf32>
    %19 = vector.broadcast %17 : vector<64x1xf32> to vector<64x128xf32>
    %20 = vector.broadcast %18 : vector<1x128xf32> to vector<64x128xf32>
    %21 = arith.mulf %19, %20 : vector<64x128xf32>
    %22 = arith.addf %16, %21 : vector<64x128xf32>
    %c0_5 = arith.constant 0 : index
    %c0_6 = arith.constant 0 : index
    %23 = vector.load %arg4[%c0_5, %c0_6] : memref<64x1xf32, #tpu.memory_space<vmem>>, vector<64x1xf32>
    %24 = vector.broadcast %23 : vector<64x1xf32> to vector<64x128xf32>
    %25 = arith.addf %22, %24 : vector<64x128xf32>
    %cst = arith.constant 0.000000e+00 : f32
    %26 = vector.broadcast %cst : f32 to vector<64x128xf32>
    %27 = arith.maximumf %25, %26 : vector<64x128xf32>
    %28 = arith.truncf %27 : vector<64x128xf32> to vector<64x128xbf16>
    %c0_7 = arith.constant 0 : index
    %c0_8 = arith.constant 0 : index
    %29 = vector.load %arg5[%c0_7, %c0_8] : memref<128x64xbf16, #tpu.memory_space<vmem>>, vector<128x64xbf16>
    %cst_9 = arith.constant dense<0.000000e+00> : vector<128x128xf32>
    %30 = tpu.matmul %29, %28, %cst_9 {dimension_numbers = #tpu.dot_dimension_numbers<[1], [0], [0], [1], [0, 0, 1, 1], [], []>} : vector<128x64xbf16>, vector<64x128xbf16>, vector<128x128xf32> -> vector<128x128xf32>
    %c0_10 = arith.constant 0 : index
    %c0_11 = arith.constant 0 : index
    %31 = vector.load %arg6[%c0_10, %c0_11] : memref<128x1xf32, #tpu.memory_space<vmem>>, vector<128x1xf32>
    %32 = vector.broadcast %31 : vector<128x1xf32> to vector<128x128xf32>
    %33 = arith.addf %30, %32 : vector<128x128xf32>
    %cst_12 = arith.constant 0.000000e+00 : f32
    %34 = vector.broadcast %cst_12 : f32 to vector<128x128xf32>
    %35 = arith.maximumf %33, %34 : vector<128x128xf32>
    %36 = arith.truncf %35 : vector<128x128xf32> to vector<128x128xbf16>
    %c0_13 = arith.constant 0 : index
    %c0_14 = arith.constant 0 : index
    %37 = vector.load %arg7[%c0_13, %c0_14] : memref<1024x128xbf16, #tpu.memory_space<vmem>>, vector<256x128xbf16>
    %cst_15 = arith.constant dense<0.000000e+00> : vector<256x128xf32>
    %38 = tpu.matmul %37, %36, %cst_15 {dimension_numbers = #tpu.dot_dimension_numbers<[1], [0], [0], [1], [0, 0, 1, 1], [], []>} : vector<256x128xbf16>, vector<128x128xbf16>, vector<256x128xf32> -> vector<256x128xf32>
    %c0_16 = arith.constant 0 : index
    %c0_17 = arith.constant 0 : index
    %39 = vector.load %arg10[%c0_16, %c0_17] : memref<1024x128xf32, #tpu.memory_space<vmem>>, vector<256x128xf32>
    %40 = arith.maximumf %39, %38 : vector<256x128xf32>
    %c0_18 = arith.constant 0 : index
    %c0_19 = arith.constant 0 : index
    %41 = vector.load %arg10[%c0_18, %c0_19] : memref<1024x128xf32, #tpu.memory_space<vmem>>, vector<256x128xf32>
    tpu.vector_store %arg10[%c0_18, %c0_19], %40 {strides = array<i32>} : memref<1024x128xf32, #tpu.memory_space<vmem>>, vector<256x128xf32>,
    %c256 = arith.constant 256 : index
    %c0_20 = arith.constant 0 : index
    %42 = vector.load %arg7[%c256, %c0_20] : memref<1024x128xbf16, #tpu.memory_space<vmem>>, vector<256x128xbf16>
    %cst_21 = arith.constant dense<0.000000e+00> : vector<256x128xf32>
    %43 = tpu.matmul %42, %36, %cst_21 {dimension_numbers = #tpu.dot_dimension_numbers<[1], [0], [0], [1], [0, 0, 1, 1], [], []>} : vector<256x128xbf16>, vector<128x128xbf16>, vector<256x128xf32> -> vector<256x128xf32>
    %c256_22 = arith.constant 256 : index
    %c0_23 = arith.constant 0 : index
    %44 = vector.load %arg10[%c256_22, %c0_23] : memref<1024x128xf32, #tpu.memory_space<vmem>>, vector<256x128xf32>
    %45 = arith.maximumf %44, %43 : vector<256x128xf32>
    %c256_24 = arith.constant 256 : index
    %c0_25 = arith.constant 0 : index
    %46 = vector.load %arg10[%c256_24, %c0_25] : memref<1024x128xf32, #tpu.memory_space<vmem>>, vector<256x128xf32>
    tpu.vector_store %arg10[%c256_24, %c0_25], %45 {strides = array<i32>} : memref<1024x128xf32, #tpu.memory_space<vmem>>, vector<256x128xf32>,
    %c512 = arith.constant 512 : index
    %c0_26 = arith.constant 0 : index
    %47 = vector.load %arg7[%c512, %c0_26] : memref<1024x128xbf16, #tpu.memory_space<vmem>>, vector<256x128xbf16>
    %cst_27 = arith.constant dense<0.000000e+00> : vector<256x128xf32>
    %48 = tpu.matmul %47, %36, %cst_27 {dimension_numbers = #tpu.dot_dimension_numbers<[1], [0], [0], [1], [0, 0, 1, 1], [], []>} : vector<256x128xbf16>, vector<128x128xbf16>, vector<256x128xf32> -> vector<256x128xf32>
    %c512_28 = arith.constant 512 : index
    %c0_29 = arith.constant 0 : index
    %49 = vector.load %arg10[%c512_28, %c0_29] : memref<1024x128xf32, #tpu.memory_space<vmem>>, vector<256x128xf32>
    %50 = arith.maximumf %49, %48 : vector<256x128xf32>
    %c512_30 = arith.constant 512 : index
    %c0_31 = arith.constant 0 : index
    %51 = vector.load %arg10[%c512_30, %c0_31] : memref<1024x128xf32, #tpu.memory_space<vmem>>, vector<256x128xf32>
    tpu.vector_store %arg10[%c512_30, %c0_31], %50 {strides = array<i32>} : memref<1024x128xf32, #tpu.memory_space<vmem>>, vector<256x128xf32>,
    %c768 = arith.constant 768 : index
    %c0_32 = arith.constant 0 : index
    %52 = vector.load %arg7[%c768, %c0_32] : memref<1024x128xbf16, #tpu.memory_space<vmem>>, vector<256x128xbf16>
    %cst_33 = arith.constant dense<0.000000e+00> : vector<256x128xf32>
    %53 = tpu.matmul %52, %36, %cst_33 {dimension_numbers = #tpu.dot_dimension_numbers<[1], [0], [0], [1], [0, 0, 1, 1], [], []>} : vector<256x128xbf16>, vector<128x128xbf16>, vector<256x128xf32> -> vector<256x128xf32>
    %c768_34 = arith.constant 768 : index
    %c0_35 = arith.constant 0 : index
    %54 = vector.load %arg10[%c768_34, %c0_35] : memref<1024x128xf32, #tpu.memory_space<vmem>>, vector<256x128xf32>
    %55 = arith.maximumf %54, %53 : vector<256x128xf32>
    %c768_36 = arith.constant 768 : index
    %c0_37 = arith.constant 0 : index
    %56 = vector.load %arg10[%c768_36, %c0_37] : memref<1024x128xf32, #tpu.memory_space<vmem>>, vector<256x128xf32>
    tpu.vector_store %arg10[%c768_36, %c0_37], %55 {strides = array<i32>} : memref<1024x128xf32, #tpu.memory_space<vmem>>, vector<256x128xf32>,
    %c0_i32_38 = arith.constant 0 : i32
    %57 = arith.cmpi eq, %arg1, %c0_i32_38 : i32
    %58 = arith.extui %57 : i1 to i32
    %c0_i32_39 = arith.constant 0 : i32
    %59 = arith.cmpi ne, %58, %c0_i32_39 : i32
    scf.if %59 {
      %c0_40 = arith.constant 0 : index
      %c0_41 = arith.constant 0 : index
      %60 = vector.load %arg10[%c0_40, %c0_41] : memref<1024x128xf32, #tpu.memory_space<vmem>>, vector<1024x128xf32>
      %61 = tpu.transpose %60, [1, 0] : vector<1024x128xf32> -> vector<128x1024xf32>
      %cst_42 = arith.constant dense<0xFF800000> : vector<1024xf32>
      %62 = vector.multi_reduction <maximumf>, %61, %cst_42 [0] : vector<128x1024xf32> to vector<1024xf32>
      %63 = vector.shape_cast %62 : vector<1024xf32> to vector<1x1024xf32>
      %c0_43 = arith.constant 0 : index
      %c0_44 = arith.constant 0 : index
      %64 = vector.load %arg8[%c0_43, %c0_44] : memref<1x1024xf32, #tpu.memory_space<vmem>>, vector<1x1024xf32>
      %65 = arith.addf %63, %64 : vector<1x1024xf32>
      %cst_45 = arith.constant 0.000000e+00 : f32
      %66 = vector.broadcast %cst_45 : f32 to vector<1x1024xf32>
      %67 = arith.maximumf %65, %66 : vector<1x1024xf32>
      %c0_46 = arith.constant 0 : index
      %c0_47 = arith.constant 0 : index
      %c0_48 = arith.constant 0 : index
      %68 = vector.load %arg9[%c0_46, %c0_47, %c0_48] : memref<1x1x1024xf32, #tpu.memory_space<vmem>>, vector<1x1x1024xf32>
      %69 = vector.shape_cast %68 : vector<1x1x1024xf32> to vector<1x1024xf32>
      %70 = vector.shape_cast %67 : vector<1x1024xf32> to vector<1x1x1024xf32>
      tpu.vector_store %arg9[%c0_46, %c0_47, %c0_48], %70 {strides = array<i32>} : memref<1x1x1024xf32, #tpu.memory_space<vmem>>, vector<1x1x1024xf32>,
    } else {
    }
    return
  }
  func.func @transform_0(%arg0: i32, %arg1: i32) -> (i32, i32, i32) {
    %c0_i32 = arith.constant 0 : i32
    %c0_i32_0 = arith.constant 0 : i32
    return %arg0, %c0_i32, %arg1 : i32, i32, i32
  }
  func.func @transform_1(%arg0: i32, %arg1: i32) -> (i32, i32) {
    %c0_i32 = arith.constant 0 : i32
    %c0_i32_0 = arith.constant 0 : i32
    %c0_i32_1 = arith.constant 0 : i32
    return %c0_i32, %c0_i32_0 : i32, i32
  }
  func.func @transform_2(%arg0: i32, %arg1: i32) -> (i32, i32) {
    %c0_i32 = arith.constant 0 : i32
    %c0_i32_0 = arith.constant 0 : i32
    %c0_i32_1 = arith.constant 0 : i32
    return %c0_i32, %c0_i32_0 : i32, i32
  }
  func.func @transform_3(%arg0: i32, %arg1: i32) -> (i32, i32) {
    %c0_i32 = arith.constant 0 : i32
    %c0_i32_0 = arith.constant 0 : i32
    %c0_i32_1 = arith.constant 0 : i32
    return %c0_i32, %c0_i32_0 : i32, i32
  }
  func.func @transform_4(%arg0: i32, %arg1: i32) -> (i32, i32) {
    %c0_i32 = arith.constant 0 : i32
    %c0_i32_0 = arith.constant 0 : i32
    %c0_i32_1 = arith.constant 0 : i32
    return %c0_i32, %c0_i32_0 : i32, i32
  }
  func.func @transform_5(%arg0: i32, %arg1: i32) -> (i32, i32) {
    %c0_i32 = arith.constant 0 : i32
    %c0_i32_0 = arith.constant 0 : i32
    %c0_i32_1 = arith.constant 0 : i32
    return %c0_i32, %c0_i32_0 : i32, i32
  }
  func.func @transform_6(%arg0: i32, %arg1: i32) -> (i32, i32) {
    %c0_i32 = arith.constant 0 : i32
    %c0_i32_0 = arith.constant 0 : i32
    %c0_i32_1 = arith.constant 0 : i32
    return %c0_i32, %c0_i32_0 : i32, i32
  }
  func.func @transform_7(%arg0: i32, %arg1: i32) -> (i32, i32, i32) {
    %c0_i32 = arith.constant 0 : i32
    %c0_i32_0 = arith.constant 0 : i32
    %c0_i32_1 = arith.constant 0 : i32
    return %arg0, %c0_i32, %c0_i32_0 : i32, i32, i32
  }
}

</mosaic_0001>

<bundles_post_ra>
// kernel: tpu_custom_call.1
= control target key start
LH: loop header
LB: loop body
LE: loop exit
PB: predicated region body
PF: predicated region fallthrough
CT: control target
= control target key end

     0   :  { %12 = vsyncpa [#allocation4], 0  ;;  %s4603_s0 = inlined_call_operand.vmem [shape: f32[2,3,128], index: 0, kind: input, shape index: {}]   ;;  %s4604_s1 = inlined_call_operand.vmem [shape: f32[64,3], index: 1, kind: input, shape index: {}]   ;;  %s4605_s2 = inlined_call_operand.vmem [shape: f32[64,1], index: 2, kind: input, shape index: {}]   ;;  %s4606_s3 = inlined_call_operand.vmem [shape: bf16[128,64], index: 3, kind: input, shape index: {}]   ;;  %s4607_s4 = inlined_call_operand.vmem [shape: f32[128,1], index: 4, kind: input, shape index: {}]   ;;  %s4608_s5 = inlined_call_operand.hbm [shape: bf16[1024,128], index: 5, kind: input, shape index: {}]   ;;  %s4609_s6 = inlined_call_operand.vmem [shape: f32[1,1024], index: 6, kind: input, shape index: {}]   ;;  %s4610_s7 = inlined_call_operand.hbm [shape: f32[2,1,1024], index: 7, kind: output, shape index: {}]  }
   0x1   :  { %13 = vsyncpa [#allocation5], 0 }
   0x2   :  { %15 = vsyncpa [#allocation5 + $0x1], 0  ;;  %s4035_s24 = smov 0   ;;  %s4037_s25 = smov 0  }
   0x3   :  { %s4039_s26 = smov 0   ;;  %s4041_s27 = smov 0  }
   0x4   :  { %s4043_s28 = smov 0   ;;  %s4045_s29 = smov 0  }
   0x5 LB: > { %s3285_s30 = sadd.s32 4294967295, %s3985_s29   ;;  %s3286_s8 = sadd.s32 4294967294, %s3985_s29   ;;  %s3985_s29 = sphi %s4045_s29, %s21_s29   ;;  %s3981_s28 = sphi %s4043_s28, %s4619_s28   ;;  %s3977_s27 = sphi %s4041_s27, %s4618_s27   ;;  %s3973_s26 = sphi %s4039_s26, %s4617_s26   ;;  %s3969_s25 = sphi %s4037_s25, %s4616_s25   ;;  %s3965_s24 = sphi %s4035_s24, %s4615_s24  }
   0x6   : > { %s33_s9 = sadd.s32 1, %s3981_s28  ;;  %s194_s10 = sadd.s32 1, %s3973_s26 }
   0x7   : > { %p35_p0 = scmp.ge.s32.totalorder %s33_s9, 2  ;;  %p204_p1 = scmp.ne.s32.totalorder %s3973_s26, %s3969_s25 }
   0x8   : > { %p205_p2 = scmp.eq.s32.totalorder %s3285_s30, 1  ;;  %p210_p3 = scmp.ne.s32.totalorder %s3969_s25, %s3965_s24 }
   0x9   : > { %s4621_s9 = smov (%p35_p0, %s33_s9), 0  ;;  %p211_p5 = scmp.eq.s32.totalorder %s3286_s8, 1 }
   0xa   : > { %p4075_p4 = por %p205_p2, %p204_p1  ;;  %s191_s12 = ssub.s32 %s3981_s28, %s4621_s9 }
   0xb   : > { %p3287_p6 = scmp.ge.s32.totalorder %s3985_s29, 1  ;;  %p192_p7 = scmp.eq.s32.totalorder %s191_s12, 0 }
   0xc   : > { %p4082_p8 = por %p211_p5, %p210_p3  ;;  %p218_p9 = scmp.lt.s32.totalorder %s3985_s29, 3 }
   0xd   : > { %s4088_s14 = scalar_select %p192_p7, %s3973_s26, %s194_s10  }
   0xe   : > { %p4090_p10 = pnand %p3287_p6, %p218_p9  ;;  %p4094_p11 = scmp.eq.s32.totalorder %s3285_s30, 0 }
   0xf   : > { %s3987_s17 = smov [#allocation3]  }
  0x10   : > { %p3726_p12 = pneg %p4090_p10  ;;  %s242_s18 = sshll.u32 %s3987_s17, 4  ;;  %s243_s18 = int_to_ptr.vmem [resolvable:$true] %s242_s18 }
  0x11   : > { %s3890_s19 = scalar_lea.vmem %s243_s18, 8192  ;;  %p3898_p5 = scmp.lt.s32.totalorder %s243_s18, %s243_s18 }
  0x12   : > { %p3727_p13 = pnand %p4094_p11, %p3726_p12  ;;  %p3891_p1 = scmp.ne.s32.totalorder %s243_s18, %s3890_s19 }
  0x13   : > { %p3899_p6 = scmp.lt.s32.totalorder %s3890_s19, %s3890_s19 }
  0x14   : > { %p3881_p0 = pneg %p3727_p13 }
  0x15   : > { %p3900_p7 = por %p3899_p6, %p3898_p5 }
  0x16   : > { %p3893_p2 = pnand %p3891_p1, %p3881_p0 }
  0x18   : > { %p3894_p3 = pneg %p3893_p2 }
  0x1a   : > { %p3901_p9 = pnand %p3900_p7, %p3894_p3 }
  0x1c   : > { %3904 = shalt.err (!%p3901_p9)
}
  0x1d   : > { %s3988_s20 = smov 64   ;;  %s3989_s21 = smov 4  }
  0x1e   : > { %3729 = dma.hbm_to_vmem [thread:$0]  (!%p3727_p13), %s4608_s5, 8192, %s243_s18, [#allocation4], %s3988_s20, %s3988_s20, %s3989_s21  }
  0x1f   : > { %271 = sbr.rel (%p4090_p10) target bundleno = 1132 (0x46c), region = 48 }
  0x24   : > { %3956 = dma.done.wait (%p4094_p11), [#allocation4], 8192  }
  0x25   : > { %3958 = vsyncadd (%p4094_p11), [#allocation4], 4294959104  ;;  %v3990_v0 = vmov 2   ;;  %v3991_v1 = vmov 1   ;;  %v452_v2 = vld [vmem:[%s4604_s1 + $0x30] sm:$0xff]  ;;  %v453_v3 = vld [vmem:[%s4604_s1 + $0x38] sm:$0xff]  ;;  %v494_v42 = vlaneseq }
  0x26   : > { %3793 = vset.pattern.permute.xlu0 %v3990_v0  ;;  %3792 = vset.pattern.permute.xlu1 %v3991_v1  ;;  %v450_v4 = vld [vmem:[%s4604_s1 + $0x20] sm:$0xff]  ;;  %v449_v5 = vld [vmem:[%s4604_s1 + $0x18] sm:$0xff]  ;;  %v448_v6 = vld [vmem:[%s4604_s1 + $0x10] sm:$0xff]  ;;  %v3992_v8 = vmov 0   ;;  %vm830_vm0 = vcmask 523264   ;;  %p305_p10 = scmp.lt.s32.totalorder %s3977_s27, 1 }
  0x27   : > { %583 = vperm.xlu0 %3793, %v452_v2   ;;  %531 = vperm.xlu1 %3792, %v452_v2   ;;  %v447_v7 = vld [vmem:[%s4604_s1 + $0x8] sm:$0xff]  ;;  %v616_v10 = vld [vmem:[%s4605_s2 + $0x30] sm:$0xff]  ;;  %v617_v11 = vld [vmem:[%s4605_s2 + $0x38] sm:$0xff]  ;;  %v4225_v44 = vshrl.u32 %v494_v42, 7  ;;  %s302_s20 = sand.u32 1, %s3969_s25   ;;  %s3379_s22 = sshll.u32 %s3977_s27, 7 }
  0x28   : > { %v451_v9 = vld [vmem:[%s4604_s1 + $0x28] sm:$0xff]  ;;  %v446_v12 = vld [vmem:[%s4604_s1] sm:$0xff]  ;;  %v612_v13 = vld [vmem:[%s4605_s2 + $0x10] sm:$0xff]  ;;  %s306_s8 = scalar_select %p305_p10, %s3977_s27, 1 }
  0x29   : > { %v611_v14 = vld [vmem:[%s4605_s2 + $0x8] sm:$0xff]  ;;  %v709_v15 = vld [vmem:[%s4607_s4 + $0x78] sm:$0xff]  ;;  %v614_v17 = vld [vmem:[%s4605_s2 + $0x20] sm:$0xff]  ;;  %v540_v47 = vsub.s32 1, %v4225_v44  ;;  %v496_v48 = vsub.s32 0, %v4225_v44  ;;  %v592_v52 = vsub.s32 2, %v4225_v44  ;;  %s3201_s12 = scalar_lea.hbm %s4610_s7, %s3379_s22 }
  0x2a   : > { %v707_v16 = vld [vmem:[%s4607_s4 + $0x68] sm:$0xff]  ;;  %v705_v18 = vld [vmem:[%s4607_s4 + $0x58] sm:$0xff]  ;;  %v610_v26 = vld [vmem:[%s4605_s2] sm:$0xff]  ;;  %s3293_s10 = sshll.u32 %s306_s8, 2  ;;  %s3292_s21 = sshll.u32 %s302_s20, 3 }
  0x2b   : > { %535 = vperm.xlu1 %3792, %v453_v3   ;;  %575 = vperm.xlu0 %3793, %v450_v4   ;;  %v615_v19 = vld [vmem:[%s4605_s2 + $0x28] sm:$0xff]  ;;  %v701_v21 = vld [vmem:[%s4607_s4 + $0x38] sm:$0xff]  ;;  %v708_v27 = vld [vmem:[%s4607_s4 + $0x70] sm:$0xff]  ;;  %s311_s17 = scalar_lea.vmem %s4603_s0, %s3293_s10  ;;  %s304_s23 = scalar_lea.vmem [#allocation6], %s3292_s21 }
  0x2c   : > { %v703_v20 = vld [vmem:[%s4607_s4 + $0x48] sm:$0xff]  ;;  %v697_v23 = vld [vmem:[%s4607_s4 + $0x18] sm:$0xff]  ;;  %v3807_v28 = vld [vmem:[%s4606_s3] sm:$0xff]   ;;  %s3203_s30 = sshll.u32 %s304_s23, 4  ;;  %s3189_s15 = scalar_lea.sflag [#allocation5], %s302_s20  ;;  %s3204_s30 = int_to_ptr.vmem [resolvable:$true] %s3203_s30 }
  0x2d   : > { %v699_v22 = vld [vmem:[%s4607_s4 + $0x28] sm:$0xff]  ;;  %v613_v25 = vld [vmem:[%s4605_s2 + $0x18] sm:$0xff]  ;;  %v706_v29 = vld [vmem:[%s4607_s4 + $0x60] sm:$0xff]  ;;  %3496 = vmatprep.mubr.msk.bf16.mxu0 %vm830_vm0, %v3807_v28  ;;  %s3994_s27 = smov [#allocation6]  }
  0x2e   : > { %v695_v24 = vld [vmem:[%s4607_s4 + $0x8] sm:$0xff]  ;;  %v704_v30 = vld [vmem:[%s4607_s4 + $0x50] sm:$0xff]  ;;  %v702_v31 = vld [vmem:[%s4607_s4 + $0x40] sm:$0xff]  ;;  %s3909_s16 = sshll.u32 %s3994_s27, 4  ;;  %s3910_s16 = int_to_ptr.vmem [resolvable:$false] %s3909_s16 }
  0x2f   : > { %3794 = vset.pattern.permute.xlu1 %v3990_v0  ;;  %571 = vperm.xlu0 %3793, %v449_v5   ;;  %v700_v32 = vld [vmem:[%s4607_s4 + $0x30] sm:$0xff]  ;;  %v698_v33 = vld [vmem:[%s4607_s4 + $0x20] sm:$0xff]  ;;  %s3911_s18 = scalar_lea.vmem %s3910_s16, 256  ;;  %p3912_p0 = scmp.lt.s32.totalorder %s3204_s30, %s3910_s16 }
  0x30   : > { %587 = vperm.xlu1 %3794, %v453_v3   ;;  %v696_v34 = vld [vmem:[%s4607_s4 + $0x10] sm:$0xff]  ;;  %v694_v35 = vld [vmem:[%s4607_s4] sm:$0xff] }
  0x31   : > { %v445_v49 = vld [vmem:[%s311_s17] sm:$0x7]  ;;  %s3905_s17 = scalar_lea.vmem %s3204_s30, 128 }
  0x32   : > { %v4236_v51 = vrot.slane %v445_v49, %v540_v47  ;;  %v4241_v53 = vrot.slane %v445_v49, %v496_v48  ;;  %v4247_v58 = vrot.slane %v445_v49, %v592_v52  ;;  %p3906_p11 = scmp.ne.s32.totalorder %s3204_s30, %s3905_s17  ;;  %p3913_p1 = scmp.lt.s32.totalorder %s3911_s18, %s3905_s17 }
  0x33   : > { %3801 = vset.pattern.permute.xlu0 %v3991_v1 }
  0x34   : > { %3795 = vset.pattern.permute.xlu1 %v3992_v8  ;;  %515 = vperm.xlu0 %3801, %v448_v6   ;;  %p3907_p12 = pnand %p3906_p11, %p4075_p4  ;;  %p3914_p2 = por %p3913_p1, %p3912_p0 }
  0x35   : > { %476 = vperm.xlu1 %3795, %v450_v4  }
  0x36   : > { %p3908_p13 = pneg %p3907_p12 }
  0x38   : > { %511 = vperm.xlu0 %3801, %v447_v7   ;;  %p3915_p3 = pnand %p3914_p2, %p3908_p13 }
  0x39   : > { %3796 = vset.pattern.permute.xlu1 %v3991_v1 }
  0x3a   : > { %523 = vperm.xlu1 %3796, %v450_v4  }
  0x3c   : > { %3804 = vset.pattern.permute.xlu0 %v3992_v8 }
  0x3d   : > { %486 = vperm.xlu0 %3804, %v452_v2  }
  0x3e   : > { %527 = vperm.xlu1 %3796, %v451_v9  }
  0x41   : > { %491 = vperm.xlu0 %3804, %v453_v3  }
  0x42   : > { %3797 = vset.pattern.permute.xlu1 %v3990_v0 }
  0x43   : > { %579 = vperm.xlu1 %3797, %v451_v9  }
  0x45   : > { %481 = vperm.xlu0 %3804, %v451_v9  }
  0x47   : > { %3798 = vset.pattern.permute.xlu1 %v3992_v8 }
  0x48   : > { %650 = vperm.xlu1 %3798, %v616_v10  }
  0x49   : > { %655 = vperm.xlu0 %3804, %v617_v11  }
  0x4c   : > { %466 = vperm.xlu1 %3798, %v448_v6  }
  0x4d   : > { %456 = vperm.xlu0 %3804, %v446_v12  }
  0x50   : > { %471 = vperm.xlu1 %3798, %v449_v5  }
  0x51   : > { %630 = vperm.xlu0 %3804, %v612_v13  }
  0x54   : > { %3799 = vset.pattern.permute.xlu1 %v3991_v1 }
  0x55   : > { %519 = vperm.xlu1 %3799, %v449_v5   ;;  %625 = vperm.xlu0 %3804, %v611_v14  }
  0x59   : > { %3800 = vset.pattern.permute.xlu1 %v3990_v0  ;;  %787 = vperm.xlu0 %3804, %v709_v15  }
  0x5a   : > { %567 = vperm.xlu1 %3800, %v448_v6  }
  0x5d   : > { %777 = vperm.xlu0 %3804, %v707_v16  }
  0x5e   : > { %3802 = vset.pattern.permute.xlu1 %v3992_v8 }
  0x5f   : > { %640 = vperm.xlu1 %3802, %v614_v17  }
  0x61   : > { %767 = vperm.xlu0 %3804, %v705_v18  }
  0x63   : > { %645 = vperm.xlu1 %3802, %v615_v19  }
  0x65   : > { %757 = vperm.xlu0 %3804, %v703_v20  }
  0x67   : > { %461 = vperm.xlu1 %3802, %v447_v7  }
  0x69   : > { %747 = vperm.xlu0 %3804, %v701_v21  }
  0x6b   : > { %3803 = vset.pattern.permute.xlu1 %v3991_v1 }
  0x6c   : > { %507 = vperm.xlu1 %3803, %v446_v12  }
  0x6d   : > { %737 = vperm.xlu0 %3804, %v699_v22  }
  0x70   : > { %3805 = vset.pattern.permute.xlu1 %v3990_v0 }
  0x71   : > { %727 = vperm.xlu0 %3804, %v697_v23   ;;  %559 = vperm.xlu1 %3805, %v446_v12  }
  0x75   : > { %717 = vperm.xlu0 %3804, %v695_v24   ;;  %563 = vperm.xlu1 %3805, %v447_v7  }
  0x79   : > { %3806 = vset.pattern.permute.xlu1 %v3992_v8 }
  0x7a   : > { %635 = vperm.xlu1 %3806, %v613_v25  }
  0x7e   : > { %620 = vperm.xlu1 %3806, %v610_v26  }
  0x82   : > { %782 = vperm.xlu1 %3806, %v708_v27  }
  0x86   : > { %772 = vperm.xlu1 %3806, %v706_v29  }
  0x8a   : > { %762 = vperm.xlu1 %3806, %v704_v30  }
  0x8e   : > { %752 = vperm.xlu1 %3806, %v702_v31  }
  0x92   : > { %742 = vperm.xlu1 %3806, %v700_v32  }
  0x96   : > { %732 = vperm.xlu1 %3806, %v698_v33  }
  0x9a   : > { %722 = vperm.xlu1 %3806, %v696_v34  }
  0x9e   : > { %712 = vperm.xlu1 %3806, %v694_v35  }
  0xa2   : > { %v532_v36 = vpop.permute.xlu1 %531  ;;  %v584_v37 = vpop.permute.xlu0 %583 }
  0xa3   : > { %v548_v57 = vmul.f32 %v4236_v51, %v532_v36  ;;  %v600_v62 = vmul.f32 %v4247_v58, %v584_v37 }
  0xa6   : > { %v536_v38 = vpop.permute.xlu1 %535  ;;  %v576_v39 = vpop.permute.xlu0 %575 }
  0xa7   : > { %v549_v60 = vmul.f32 %v4236_v51, %v536_v38  ;;  %v598_v20 = vmul.f32 %v4247_v58, %v576_v39 }
  0xaa   : > { %v4222_v40 = vpop.permute.xlu0 %571 }
  0xab   : > { %v588_v41 = vpop.permute.xlu1 %587 }
  0xac   : > { %v601_v3 = vmul.f32 %v4247_v58, %v588_v41 }
  0xaf   : > { %v516_v43 = vpop.permute.xlu0 %515 }
  0xb0   : > { %v477_v45 = vpop.permute.xlu1 %476  ;;  %v544_v36 = vmul.f32 %v4236_v51, %v516_v43 }
  0xb1   : > { %v502_v17 = vmul.f32 %v4241_v53, %v477_v45 }
  0xb3   : > { %v4230_v46 = vpop.permute.xlu0 %511 }
  0xb5   : > { %v524_v50 = vpop.permute.xlu1 %523 }
  0xb6   : > { %v546_v16 = vmul.f32 %v4236_v51, %v524_v50 }
  0xb8   : > { %v487_v54 = vpop.permute.xlu0 %486  ;;  %v554_v21 = vadd.f32 %v546_v16, %v502_v17  ;;  %v3811_v16 = vld [vmem:[%s4606_s3 + $0x20] sm:$0xff]   ;;  %v3812_v17 = vld [vmem:[%s4606_s3 + $0x28] sm:$0xff]  }
  0xb9   : > { %v528_v55 = vpop.permute.xlu1 %527  ;;  %v504_v56 = vmul.f32 %v4241_v53, %v487_v54  ;;  %v543_v54 = vmul.f32 %v4236_v51, %v4230_v46 }
  0xba   : > { %v547_v22 = vmul.f32 %v4236_v51, %v528_v55  ;;  %v606_v26 = vadd.f32 %v598_v20, %v554_v21  ;;  %v3815_v20 = vld [vmem:[#allocation3] sm:$0xff]  }
  0xbb   : > { %v556_v63 = vadd.f32 %v548_v57, %v504_v56  ;;  %v3816_v21 = vld [vmem:[#allocation3 + $0x80] sm:$0xff]   ;;  %3528 = vmatprep.mubr.bf16.mxu1 %v3815_v20 }
  0xbc   : > { %v492_v59 = vpop.permute.xlu0 %491 }
  0xbd   : > { %v505_v61 = vmul.f32 %v4241_v53, %v492_v59  ;;  %v608_v4 = vadd.f32 %v600_v62, %v556_v63 }
  0xbe   : > { %v580_v0 = vpop.permute.xlu1 %579 }
  0xbf   : > { %v557_v1 = vadd.f32 %v549_v60, %v505_v61  ;;  %v599_v25 = vmul.f32 %v4247_v58, %v580_v0  ;;  %v597_v60 = vmul.f32 %v4247_v58, %v4222_v40 }
  0xc0   : > { %v482_v2 = vpop.permute.xlu0 %481 }
  0xc1   : > { %v609_v6 = vadd.f32 %v601_v3, %v557_v1  ;;  %v503_v18 = vmul.f32 %v4241_v53, %v482_v2 }
  0xc3   : > { %v651_v5 = vpop.permute.xlu1 %650  ;;  %v555_v23 = vadd.f32 %v547_v22, %v503_v18  ;;  %v3813_v18 = vld [vmem:[%s4606_s3 + $0x30] sm:$0xff]  }
  0xc4   : > { %v664_v7 = vadd.f32 %v651_v5, %v608_v4  ;;  %v656_v8 = vpop.permute.xlu0 %655 }
  0xc5   : > { %v665_v9 = vadd.f32 %v656_v8, %v609_v6  ;;  %v607_v28 = vadd.f32 %v599_v25, %v555_v23 }
  0xc6   : > { %v672_v10 = vmax.f32 %v664_v7, 0.0 }
  0xc7   : > { %v673_v11 = vmax.f32 %v665_v9, 0.0  ;;  %v467_v12 = vpop.permute.xlu1 %466 }
  0xc8   : > { %v500_v37 = vmul.f32 %v4241_v53, %v467_v12  ;;  %v457_v38 = vpop.permute.xlu0 %456 }
  0xc9   : > { %v677_v13 = vpack.c.bf16 %v673_v11, %v672_v10  ;;  %v498_v63 = vmul.f32 %v4241_v53, %v457_v38 }
  0xca   : > { %v552_v45 = vadd.f32 %v544_v36, %v500_v37 }
  0xcb   : > { %v472_v14 = vpop.permute.xlu1 %471  ;;  %3488 = vmatprep.subr.bf16.mxu0 %v677_v13 }
  0xcc   : > { %3489 = vmatpush3.bf16.msra.mxu0 %v677_v13  ;;  %v501_v49 = vmul.f32 %v4241_v53, %v472_v14  ;;  %v631_v43 = vpop.permute.xlu0 %630  ;;  %v3809_v14 = vld [vmem:[%s4606_s3 + $0x10] sm:$0xff]  }
  0xd0   : > { %v520_v15 = vpop.permute.xlu1 %519  ;;  %v626_v6 = vpop.permute.xlu0 %625 }
  0xd1   : > { %v545_v39 = vmul.f32 %v4236_v51, %v520_v15  ;;  %v3810_v15 = vld [vmem:[%s4606_s3 + $0x18] sm:$0xff]  }
  0xd3   : > { %v553_v55 = vadd.f32 %v545_v39, %v501_v49 }
  0xd5   : > { %v568_v19 = vpop.permute.xlu1 %567  ;;  %v605_v3 = vadd.f32 %v597_v60, %v553_v55 }
  0xd6   : > { %v596_v41 = vmul.f32 %v4247_v58, %v568_v19  ;;  %v3814_v19 = vld [vmem:[%s4606_s3 + $0x38] sm:$0xff]  }
  0xd8   : > { %v604_v56 = vadd.f32 %v596_v41, %v552_v45 }
  0xda   : > { %v641_v24 = vpop.permute.xlu1 %640  ;;  %v660_v0 = vadd.f32 %v631_v43, %v604_v56 }
  0xdb   : > { %v662_v27 = vadd.f32 %v641_v24, %v606_v26  ;;  %v788_v26 = vpop.permute.xlu0 %787 }
  0xdc   : > { %v668_v8 = vmax.f32 %v660_v0, 0.0 }
  0xdd   : > { %v670_v31 = vmax.f32 %v662_v27, 0.0 }
  0xde   : > { %v646_v29 = vpop.permute.xlu1 %645 }
  0xdf   : > { %v663_v30 = vadd.f32 %v646_v29, %v607_v28 }
  0xe1   : > { %v671_v32 = vmax.f32 %v663_v30, 0.0 }
  0xe2   : > { %v462_v33 = vpop.permute.xlu1 %461 }
  0xe3   : > { %v676_v34 = vpack.c.bf16 %v671_v32, %v670_v31  ;;  %v499_v50 = vmul.f32 %v4241_v53, %v462_v33  ;;  %v778_v31 = vpop.permute.xlu0 %777 }
  0xe5   : > { %3490 = vmatprep.subr.bf16.mxu0 %v676_v34  ;;  %v551_v61 = vadd.f32 %v543_v54, %v499_v50 }
  0xe6   : > { %3491 = vmatpush3.bf16.msra.mxu0 %v676_v34 }
  0xe7   : > { %v508_v35 = vpop.permute.xlu1 %507  ;;  %v768_v36 = vpop.permute.xlu0 %767 }
  0xe8   : > { %v542_v62 = vmul.f32 %v4236_v51, %v508_v35 }
  0xea   : > { %v550_v4 = vadd.f32 %v542_v62, %v498_v63 }
  0xec   : > { %v560_v42 = vpop.permute.xlu1 %559 }
  0xed   : > { %v594_v1 = vmul.f32 %v4247_v58, %v560_v42  ;;  %v758_v42 = vpop.permute.xlu0 %757 }
  0xef   : > { %v602_v10 = vadd.f32 %v594_v1, %v550_v4 }
  0xf0   : > { %v564_v57 = vpop.permute.xlu1 %563 }
  0xf1   : > { %v595_v59 = vmul.f32 %v4247_v58, %v564_v57  ;;  %v3808_v58 = vld [vmem:[%s4606_s3 + $0x8] sm:$0xff]   ;;  %v748_v62 = vpop.permute.xlu0 %747 }
  0xf3   : > { %v603_v2 = vadd.f32 %v595_v59, %v551_v61 }
  0xf5   : > { %v636_v46 = vpop.permute.xlu1 %635  ;;  %v659_v7 = vadd.f32 %v626_v6, %v603_v2 }
  0xf6   : > { %v661_v5 = vadd.f32 %v636_v46, %v605_v3 }
  0xf7   : > { %v667_v51 = vmax.f32 %v659_v7, 0.0 }
  0xf8   : > { %v669_v9 = vmax.f32 %v661_v5, 0.0 }
  0xf9   : > { %v621_v11 = vpop.permute.xlu1 %620 }
  0xfa   : > { %v675_v40 = vpack.c.bf16 %v669_v9, %v668_v8  ;;  %v658_v12 = vadd.f32 %v621_v11, %v602_v10  ;;  %v738_v8 = vpop.permute.xlu0 %737 }
  0xfc   : > { %v666_v13 = vmax.f32 %v658_v12, 0.0  ;;  %3492 = vmatprep.subr.bf16.mxu0 %v675_v40 }
  0xfd   : > { %3493 = vmatpush3.bf16.msra.mxu0 %v675_v40  ;;  %v783_v28 = vpop.permute.xlu1 %782 }
  0xfe   : > { %v674_v53 = vpack.c.bf16 %v667_v51, %v666_v13 }
 0x100   : > { %3494 = vmatprep.subr.bf16.mxu0 %v674_v53 }
 0x101   : > { %3495 = vmatpush3.bf16.msra.mxu0 %v674_v53  ;;  %v773_v33 = vpop.permute.xlu1 %772 }
 0x104   : > { %3497 = vmatmul.mubr.msk.bf16.vlgmr.msra.gmra.mxu0 %vm830_vm0, %v3808_v58 }
 0x105   : > { %3500 = vmatprep.mubr.msk.bf16.mxu0 %vm830_vm0, %v3809_v14  ;;  %v763_v38 = vpop.permute.xlu1 %762  ;;  %v728_v14 = vpop.permute.xlu0 %727 }
 0x109   : > { %v753_v50 = vpop.permute.xlu1 %752 }
 0x10c   : > { %3501 = vmatmul.mubr.msk.bf16.gmra.mxu0 %vm830_vm0, %v3810_v15 }
 0x10d   : > { %3504 = vmatprep.mubr.msk.bf16.mxu0 %vm830_vm0, %v3811_v16  ;;  %v743_v3 = vpop.permute.xlu1 %742 }
 0x111   : > { %v733_v40 = vpop.permute.xlu1 %732 }
 0x114   : > { %3505 = vmatmul.mubr.msk.bf16.gmra.mxu0 %vm830_vm0, %v3812_v17 }
 0x115   : > { %3508 = vmatprep.mubr.msk.bf16.mxu0 %vm830_vm0, %v3813_v18  ;;  %v723_v17 = vpop.permute.xlu1 %722 }
 0x11c   : > { %3509 = vmatmul.mubr.msk.bf16.gmra.mxu0 %vm830_vm0, %v3814_v19 }
 0x11d   : > { %3576 = vmatprep.mubr.bf16.mxu0 %v3816_v21 }
 0x1c4   : > { %v4301_v22 = vpop.f32.mrf.mxu0 }
 0x1c5   : > { %v898_v21 = vadd.f32 %v4301_v22, %v723_v17  ;;  %v3866_v17 = vld [vmem:[#allocation3 + $0x1a0] sm:$0xff]  }
 0x1c6   : > { %v4303_v23 = vpop.f32.mrf.mxu0 }
 0x1c8   : > { %v4305_v24 = vpop.f32.mrf.mxu0 }
 0x1c9   : > { %v901_v18 = vadd.f32 %v4305_v24, %v728_v14  ;;  %v713_v24 = vpop.permute.xlu1 %712  ;;  %v3848_v14 = vld [vmem:[#allocation3 + $0x118] sm:$0xff]  }
 0x1ca   : > { %v4307_v25 = vpop.f32.mrf.mxu0 }
 0x1cc   : > { %v3502_v27 = vpop.f32.mrf.mxu0 }
 0x1cd   : > { %v914_v12 = vadd.f32 %v3502_v27, %v743_v3  ;;  %v718_v27 = vpop.permute.xlu0 %717  ;;  %v3845_v3 = vld [vmem:[#allocation3 + $0xe0] sm:$0xff]  }
 0x1ce   : > { %v905_v29 = vpop.f32.mrf.mxu0 }
 0x1cf   : > { %v958_v15 = vmax.f32 %v914_v12, 0.0  ;;  %v906_v16 = vadd.f32 %v905_v29, %v733_v40  ;;  %v893_v29 = vadd.f32 %v4307_v25, %v718_v27  ;;  %v3860_v40 = vld [vmem:[#allocation3 + $0x180] sm:$0xff]   ;;  %v3842_v12 = vld [vmem:[#allocation3 + $0x108] sm:$0xff]  }
 0x1d0   : > { %v3503_v30 = vpop.f32.mrf.mxu0  ;;  %v3872_v27 = vld [vmem:[#allocation3 + $0x1c8] sm:$0xff]  }
 0x1d1   : > { %v917_v9 = vadd.f32 %v3503_v30, %v748_v62  ;;  %v3843_v62 = vld [vmem:[#allocation3 + $0xd0] sm:$0xff]  }
 0x1d2   : > { %v908_v32 = vpop.f32.mrf.mxu0 }
 0x1d3   : > { %v959_v51 = vmax.f32 %v917_v9, 0.0  ;;  %v909_v53 = vadd.f32 %v908_v32, %v738_v8  ;;  %v890_v32 = vadd.f32 %v4303_v23, %v713_v24  ;;  %v3817_v23 = vld [vmem:[#allocation3 + $0x8] sm:$0xff]   ;;  %v3838_v8 = vld [vmem:[#allocation3 + $0x78] sm:$0xff]  }
 0x1d4   : > { %v3506_v34 = vpop.f32.mrf.mxu0  ;;  %v3851_v9 = vld [vmem:[#allocation3 + $0xf8] sm:$0xff]  }
 0x1d5   : > { %v930_v63 = vadd.f32 %v3506_v34, %v763_v38  ;;  %v4332_v19 = vpack.c.bf16 %v959_v51, %v958_v15  ;;  %v957_v20 = vmax.f32 %v909_v53, 0.0  ;;  %v952_v25 = vmax.f32 %v890_v32, 0.0  ;;  %v3820_v38 = vld [vmem:[#allocation3 + $0x18] sm:$0xff]   ;;  %v3847_v51 = vld [vmem:[#allocation3 + $0x110] sm:$0xff]   ;;  %v3875_v32 = vld [vmem:[#allocation3 + $0x1e0] sm:$0xff]  }
 0x1d6   : > { %v921_v35 = vpop.f32.mrf.mxu0  ;;  %v3863_v53 = vld [vmem:[#allocation3 + $0x190] sm:$0xff]   ;;  %v3864_v15 = vld [vmem:[#allocation3 + $0x198] sm:$0xff]  }
 0x1d7   : > { %v962_v6 = vmax.f32 %v930_v63, 0.0  ;;  %v922_v7 = vadd.f32 %v921_v35, %v753_v50  ;;  %v3818_v35 = vld [vmem:[#allocation3 + $0x88] sm:$0xff]   ;;  %v3825_v50 = vld [vmem:[#allocation3 + $0x30] sm:$0xff]   ;;  %v3832_v63 = vld [vmem:[#allocation3 + $0x58] sm:$0xff]  }
 0x1d8   : > { %v3507_v37 = vpop.f32.mrf.mxu0  ;;  %v3874_v24 = vld [vmem:[#allocation3 + $0x1d8] sm:$0xff]  }
 0x1d9   : > { %v933_v43 = vadd.f32 %v3507_v37, %v768_v36  ;;  %v960_v13 = vmax.f32 %v922_v7, 0.0  ;;  %v3819_v36 = vld [vmem:[#allocation3 + $0x10] sm:$0xff]  }
 0x1da   : > { %v924_v39 = vpop.f32.mrf.mxu0  ;;  %v3821_v37 = vld [vmem:[#allocation3 + $0x90] sm:$0xff]  }
 0x1db   : > { %v963_v46 = vmax.f32 %v933_v43, 0.0  ;;  %v925_v4 = vadd.f32 %v924_v39, %v758_v42  ;;  %v3822_v39 = vld [vmem:[#allocation3 + $0x98] sm:$0xff]   ;;  %v3827_v42 = vld [vmem:[#allocation3 + $0xa0] sm:$0xff]   ;;  %v3849_v7 = vld [vmem:[#allocation3 + $0xf0] sm:$0xff]  }
 0x1dc   : > { %v3510_v41 = vpop.f32.mrf.mxu0  ;;  %v3839_v43 = vld [vmem:[#allocation3 + $0xc0] sm:$0xff]  }
 0x1dd   : > { %v946_v49 = vadd.f32 %v3510_v41, %v783_v28  ;;  %v4319_v10 = vpack.c.bf16 %v963_v46, %v962_v6  ;;  %v961_v11 = vmax.f32 %v925_v4, 0.0  ;;  %v955_v28 = vmax.f32 %v901_v18, 0.0  ;;  %v3823_v41 = vld [vmem:[#allocation3 + $0x20] sm:$0xff]   ;;  %v3836_v46 = vld [vmem:[#allocation3 + $0x68] sm:$0xff]   ;;  %v3837_v6 = vld [vmem:[#allocation3 + $0x70] sm:$0xff]  }
 0x1de   : > { %v937_v45 = vpop.f32.mrf.mxu0  ;;  %v3846_v4 = vld [vmem:[#allocation3 + $0xe8] sm:$0xff]  }
 0x1df   : > { %v938_v55 = vadd.f32 %v937_v45, %v773_v33  ;;  %v966_v59 = vmax.f32 %v946_v49, 0.0  ;;  %v4325_v58 = vpack.c.bf16 %v961_v11, %v960_v13  ;;  %v953_v33 = vmax.f32 %v893_v29, 0.0  ;;  %v3824_v45 = vld [vmem:[#allocation3 + $0x28] sm:$0xff]   ;;  %v3841_v11 = vld [vmem:[#allocation3 + $0x100] sm:$0xff]   ;;  %v3873_v29 = vld [vmem:[#allocation3 + $0x1d0] sm:$0xff]  }
 0x1e0   : > { %v3511_v54 = vpop.f32.mrf.mxu0  ;;  %v3828_v49 = vld [vmem:[#allocation3 + $0xa8] sm:$0xff]  }
 0x1e1   : > { %v949_v56 = vadd.f32 %v3511_v54, %v788_v26  ;;  %v964_v0 = vmax.f32 %v938_v55, 0.0  ;;  %v956_v26 = vmax.f32 %v906_v16, 0.0  ;;  %v4353_v34 = vpack.c.bf16 %v953_v33, %v952_v25  ;;  %v3833_v54 = vld [vmem:[#allocation3 + $0xb0] sm:$0xff]   ;;  %v3826_v55 = vld [vmem:[#allocation3 + $0x38] sm:$0xff]   ;;  %v3862_v13 = vld [vmem:[#allocation3 + $0x188] sm:$0xff]  }
 0x1e2   : > { %v940_v57 = vpop.f32.mrf.mxu0  ;;  %v3850_v16 = vld [vmem:[#allocation3 + $0x120] sm:$0xff]   ;;  %v3868_v18 = vld [vmem:[#allocation3 + $0x1a8] sm:$0xff]   ;;  %v3865_v25 = vld [vmem:[#allocation3 + $0x170] sm:$0xff]  }
 0x1e3   : > { %v967_v60 = vmax.f32 %v949_v56, 0.0  ;;  %v941_v61 = vadd.f32 %v940_v57, %v778_v31  ;;  %v4340_v30 = vpack.c.bf16 %v957_v20, %v956_v26  ;;  %v954_v31 = vmax.f32 %v898_v21, 0.0  ;;  %v3834_v56 = vld [vmem:[#allocation3 + $0xb8] sm:$0xff]   ;;  %v3829_v57 = vld [vmem:[#allocation3 + $0x40] sm:$0xff]   ;;  %v3853_v20 = vld [vmem:[#allocation3 + $0x130] sm:$0xff]  }
 0x1e4   : > { %v3870_v21 = vld [vmem:[#allocation3 + $0x1b8] sm:$0xff]   ;;  %v3855_v26 = vld [vmem:[#allocation3 + $0x140] sm:$0xff]   ;;  %v3876_v33 = vld [vmem:[#allocation3 + $0x1e8] sm:$0xff]  }
 0x1e5   : > { %v4309_v1 = vpack.c.bf16 %v967_v60, %v966_v59  ;;  %v965_v2 = vmax.f32 %v941_v61, 0.0  ;;  %v4347_v22 = vpack.c.bf16 %v955_v28, %v954_v31  ;;  %v3830_v59 = vld [vmem:[#allocation3 + $0x48] sm:$0xff]   ;;  %v3831_v61 = vld [vmem:[#allocation3 + $0x50] sm:$0xff]   ;;  %v3859_v31 = vld [vmem:[#allocation3 + $0x160] sm:$0xff]  }
 0x1e6   : > { %v3840_v60 = vld [vmem:[#allocation3 + $0xc8] sm:$0xff]   ;;  %v3857_v28 = vld [vmem:[#allocation3 + $0x150] sm:$0xff]  }
 0x1e7   : > { %v4311_v5 = vpack.c.bf16 %v965_v2, %v964_v0  ;;  %3512 = vmatprep.subr.bf16.mxu1 %v4309_v1  ;;  %3560 = vmatprep.subr.bf16.mxu0 %v4309_v1  ;;  %v3844_v0 = vld [vmem:[#allocation3 + $0xd8] sm:$0xff]   ;;  %v3835_v2 = vld [vmem:[#allocation3 + $0x60] sm:$0xff]  }
 0x1e8   : > { %3513 = vmatpush3.bf16.msra.mxu1 %v4309_v1  ;;  %3561 = vmatpush3.bf16.msra.mxu0 %v4309_v1 }
 0x1e9   : > { %3514 = vmatprep.subr.bf16.mxu1 %v4311_v5  ;;  %3562 = vmatprep.subr.bf16.mxu0 %v4311_v5 }
 0x1ec   : > { %3515 = vmatpush3.bf16.msra.mxu1 %v4311_v5  ;;  %3563 = vmatpush3.bf16.msra.mxu0 %v4311_v5 }
 0x1ed   : > { %3516 = vmatprep.subr.bf16.mxu1 %v4319_v10  ;;  %3564 = vmatprep.subr.bf16.mxu0 %v4319_v10 }
 0x1f0   : > { %3517 = vmatpush3.bf16.msra.mxu1 %v4319_v10  ;;  %3565 = vmatpush3.bf16.msra.mxu0 %v4319_v10 }
 0x1f1   : > { %3518 = vmatprep.subr.bf16.mxu1 %v4325_v58  ;;  %3566 = vmatprep.subr.bf16.mxu0 %v4325_v58 }
 0x1f4   : > { %3519 = vmatpush3.bf16.msra.mxu1 %v4325_v58  ;;  %3567 = vmatpush3.bf16.msra.mxu0 %v4325_v58 }
 0x1f5   : > { %3520 = vmatprep.subr.bf16.mxu1 %v4332_v19  ;;  %3568 = vmatprep.subr.bf16.mxu0 %v4332_v19 }
 0x1f8   : > { %3521 = vmatpush3.bf16.msra.mxu1 %v4332_v19  ;;  %3569 = vmatpush3.bf16.msra.mxu0 %v4332_v19 }
 0x1f9   : > { %3522 = vmatprep.subr.bf16.mxu1 %v4340_v30  ;;  %3570 = vmatprep.subr.bf16.mxu0 %v4340_v30 }
 0x1fc   : > { %3523 = vmatpush3.bf16.msra.mxu1 %v4340_v30  ;;  %3571 = vmatpush3.bf16.msra.mxu0 %v4340_v30 }
 0x1fd   : > { %3524 = vmatprep.subr.bf16.mxu1 %v4347_v22  ;;  %3572 = vmatprep.subr.bf16.mxu0 %v4347_v22 }
 0x200   : > { %3525 = vmatpush3.bf16.msra.mxu1 %v4347_v22  ;;  %3573 = vmatpush3.bf16.msra.mxu0 %v4347_v22 }
 0x201   : > { %3526 = vmatprep.subr.bf16.mxu1 %v4353_v34  ;;  %3574 = vmatprep.subr.bf16.mxu0 %v4353_v34 }
 0x204   : > { %3527 = vmatpush3.bf16.msra.mxu1 %v4353_v34  ;;  %3575 = vmatpush3.bf16.msra.mxu0 %v4353_v34 }
 0x205   : > { %3608 = vmatprep.subr.bf16.mxu1 %v4309_v1  ;;  %3656 = vmatprep.subr.bf16.mxu0 %v4309_v1 }
 0x207   : > { %3529 = vmatmul.mubr.bf16.vlgmr.msra.gmra.mxu1 %v3817_v23  ;;  %3577 = vmatmul.mubr.bf16.vlgmr.msra.gmra.mxu0 %v3818_v35  ;;  %v3877_v23 = vld [vmem:[#allocation3 + $0x1f0] sm:$0xff]   ;;  %v3878_v35 = vld [vmem:[#allocation3 + $0x1f8] sm:$0xff]  }
 0x208   : > { %3609 = vmatpush3.bf16.msra.mxu1 %v4309_v1  ;;  %3657 = vmatpush3.bf16.msra.mxu0 %v4309_v1 }
 0x209   : > { %3610 = vmatprep.subr.bf16.mxu1 %v4311_v5  ;;  %3658 = vmatprep.subr.bf16.mxu0 %v4311_v5 }
 0x20a   : > { %3532 = vmatprep.mubr.bf16.mxu1 %v3819_v36  ;;  %3580 = vmatprep.mubr.bf16.mxu0 %v3821_v37 }
 0x20c   : > { %3611 = vmatpush3.bf16.msra.mxu1 %v4311_v5  ;;  %3659 = vmatpush3.bf16.msra.mxu0 %v4311_v5 }
 0x20d   : > { %3612 = vmatprep.subr.bf16.mxu1 %v4319_v10  ;;  %3660 = vmatprep.subr.bf16.mxu0 %v4319_v10 }
 0x20f   : > { %3533 = vmatmul.mubr.bf16.gmra.mxu1 %v3820_v38  ;;  %3581 = vmatmul.mubr.bf16.gmra.mxu0 %v3822_v39 }
 0x210   : > { %3613 = vmatpush3.bf16.msra.mxu1 %v4319_v10  ;;  %3661 = vmatpush3.bf16.msra.mxu0 %v4319_v10 }
 0x211   : > { %3614 = vmatprep.subr.bf16.mxu1 %v4325_v58  ;;  %3662 = vmatprep.subr.bf16.mxu0 %v4325_v58 }
 0x212   : > { %3536 = vmatprep.mubr.bf16.mxu1 %v3823_v41  ;;  %3584 = vmatprep.mubr.bf16.mxu0 %v3827_v42 }
 0x214   : > { %3615 = vmatpush3.bf16.msra.mxu1 %v4325_v58  ;;  %3663 = vmatpush3.bf16.msra.mxu0 %v4325_v58 }
 0x215   : > { %3616 = vmatprep.subr.bf16.mxu1 %v4332_v19  ;;  %3664 = vmatprep.subr.bf16.mxu0 %v4332_v19 }
 0x217   : > { %3537 = vmatmul.mubr.bf16.gmra.mxu1 %v3824_v45  ;;  %3585 = vmatmul.mubr.bf16.gmra.mxu0 %v3828_v49 }
 0x218   : > { %3617 = vmatpush3.bf16.msra.mxu1 %v4332_v19  ;;  %3665 = vmatpush3.bf16.msra.mxu0 %v4332_v19 }
 0x219   : > { %3618 = vmatprep.subr.bf16.mxu1 %v4340_v30  ;;  %3666 = vmatprep.subr.bf16.mxu0 %v4340_v30 }
 0x21a   : > { %3540 = vmatprep.mubr.bf16.mxu1 %v3825_v50  ;;  %3588 = vmatprep.mubr.bf16.mxu0 %v3833_v54 }
 0x21c   : > { %3619 = vmatpush3.bf16.msra.mxu1 %v4340_v30  ;;  %3667 = vmatpush3.bf16.msra.mxu0 %v4340_v30 }
 0x21d   : > { %3620 = vmatprep.subr.bf16.mxu1 %v4347_v22  ;;  %3668 = vmatprep.subr.bf16.mxu0 %v4347_v22 }
 0x21f   : > { %3541 = vmatmul.mubr.bf16.gmra.mxu1 %v3826_v55  ;;  %3589 = vmatmul.mubr.bf16.gmra.mxu0 %v3834_v56 }
 0x220   : > { %3621 = vmatpush3.bf16.msra.mxu1 %v4347_v22  ;;  %3669 = vmatpush3.bf16.msra.mxu0 %v4347_v22 }
 0x221   : > { %3622 = vmatprep.subr.bf16.mxu1 %v4353_v34  ;;  %3670 = vmatprep.subr.bf16.mxu0 %v4353_v34 }
 0x222   : > { %3544 = vmatprep.mubr.bf16.mxu1 %v3829_v57  ;;  %3592 = vmatprep.mubr.bf16.mxu0 %v3839_v43 }
 0x224   : > { %3623 = vmatpush3.bf16.msra.mxu1 %v4353_v34  ;;  %3671 = vmatpush3.bf16.msra.mxu0 %v4353_v34 }
 0x225   : > { %3704 = vmatprep.subr.bf16.mxu1 %v4309_v1 }
 0x227   : > { %3545 = vmatmul.mubr.bf16.gmra.mxu1 %v3830_v59  ;;  %3593 = vmatmul.mubr.bf16.gmra.mxu0 %v3840_v60 }
 0x228   : > { %3548 = vmatprep.mubr.bf16.mxu1 %v3831_v61  ;;  %3596 = vmatprep.mubr.bf16.mxu0 %v3843_v62 }
 0x22f   : > { %3549 = vmatmul.mubr.bf16.gmra.mxu1 %v3832_v63  ;;  %3597 = vmatmul.mubr.bf16.gmra.mxu0 %v3844_v0 }
 0x230   : > { %3552 = vmatprep.mubr.bf16.mxu1 %v3835_v2  ;;  %3600 = vmatprep.mubr.bf16.mxu0 %v3845_v3 }
 0x237   : > { %3553 = vmatmul.mubr.bf16.gmra.mxu1 %v3836_v46  ;;  %3601 = vmatmul.mubr.bf16.gmra.mxu0 %v3846_v4 }
 0x238   : > { %3556 = vmatprep.mubr.bf16.mxu1 %v3837_v6  ;;  %3604 = vmatprep.mubr.bf16.mxu0 %v3849_v7 }
 0x23f   : > { %3557 = vmatmul.mubr.bf16.gmra.mxu1 %v3838_v8  ;;  %3605 = vmatmul.mubr.bf16.gmra.mxu0 %v3851_v9 }
 0x240   : > { %3624 = vmatprep.mubr.bf16.mxu1 %v3841_v11  ;;  %3672 = vmatprep.mubr.bf16.mxu0 %v3860_v40 }
 0x247   : > { %3625 = vmatmul.mubr.bf16.vlgmr.msra.gmra.mxu1 %v3842_v12  ;;  %3673 = vmatmul.mubr.bf16.vlgmr.msra.gmra.mxu0 %v3862_v13 }
 0x248   : > { %3712 = vmatpush3.bf16.msra.mxu1 %v4309_v1  ;;  %3628 = vmatprep.mubr.bf16.mxu1 %v3847_v51  ;;  %v3852_v1 = vld [vmem:[#allocation3 + $0x128] sm:$0xff]  }
 0x249   : > { %3705 = vmatprep.subr.bf16.mxu1 %v4311_v5  ;;  %3676 = vmatprep.mubr.bf16.mxu0 %v3863_v53 }
 0x24c   : > { %3713 = vmatpush3.bf16.msra.mxu1 %v4311_v5  ;;  %v3869_v5 = vld [vmem:[#allocation3 + $0x1b0] sm:$0xff]  }
 0x24d   : > { %3706 = vmatprep.subr.bf16.mxu1 %v4319_v10 }
 0x24f   : > { %3629 = vmatmul.mubr.bf16.gmra.mxu1 %v3848_v14  ;;  %3677 = vmatmul.mubr.bf16.gmra.mxu0 %v3864_v15 }
 0x250   : > { %3714 = vmatpush3.bf16.msra.mxu1 %v4319_v10  ;;  %3632 = vmatprep.mubr.bf16.mxu1 %v3850_v16  ;;  %v3854_v10 = vld [vmem:[#allocation3 + $0x138] sm:$0xff]  }
 0x251   : > { %3707 = vmatprep.subr.bf16.mxu1 %v4325_v58  ;;  %3680 = vmatprep.mubr.bf16.mxu0 %v3866_v17 }
 0x254   : > { %3715 = vmatpush3.bf16.msra.mxu1 %v4325_v58  ;;  %v3871_v58 = vld [vmem:[#allocation3 + $0x1c0] sm:$0xff]  }
 0x255   : > { %3708 = vmatprep.subr.bf16.mxu1 %v4332_v19 }
 0x257   : > { %3633 = vmatmul.mubr.bf16.gmra.mxu1 %v3852_v1  ;;  %3681 = vmatmul.mubr.bf16.gmra.mxu0 %v3868_v18 }
 0x258   : > { %3716 = vmatpush3.bf16.msra.mxu1 %v4332_v19  ;;  %3636 = vmatprep.mubr.bf16.mxu1 %v3853_v20  ;;  %v3856_v19 = vld [vmem:[#allocation3 + $0x148] sm:$0xff]  }
 0x259   : > { %3709 = vmatprep.subr.bf16.mxu1 %v4340_v30  ;;  %3684 = vmatprep.mubr.bf16.mxu0 %v3869_v5 }
 0x25c   : > { %3717 = vmatpush3.bf16.msra.mxu1 %v4340_v30  ;;  %v3858_v30 = vld [vmem:[#allocation3 + $0x158] sm:$0xff]  }
 0x25d   : > { %3710 = vmatprep.subr.bf16.mxu1 %v4347_v22 }
 0x25f   : > { %3637 = vmatmul.mubr.bf16.gmra.mxu1 %v3854_v10  ;;  %3685 = vmatmul.mubr.bf16.gmra.mxu0 %v3870_v21 }
 0x260   : > { %3718 = vmatpush3.bf16.msra.mxu1 %v4347_v22  ;;  %3640 = vmatprep.mubr.bf16.mxu1 %v3855_v26  ;;  %v3861_v22 = vld [vmem:[#allocation3 + $0x168] sm:$0xff]  }
 0x261   : > { %3711 = vmatprep.subr.bf16.mxu1 %v4353_v34  ;;  %3688 = vmatprep.mubr.bf16.mxu0 %v3871_v58 }
 0x264   : > { %3719 = vmatpush3.bf16.msra.mxu1 %v4353_v34  ;;  %v3867_v34 = vld [vmem:[#allocation3 + $0x178] sm:$0xff]  }
 0x267   : > { %3641 = vmatmul.mubr.bf16.gmra.mxu1 %v3856_v19  ;;  %3689 = vmatmul.mubr.bf16.gmra.mxu0 %v3872_v27 }
 0x268   : > { %3644 = vmatprep.mubr.bf16.mxu1 %v3857_v28  ;;  %3692 = vmatprep.mubr.bf16.mxu0 %v3873_v29 }
 0x26f   : > { %3645 = vmatmul.mubr.bf16.gmra.mxu1 %v3858_v30  ;;  %3693 = vmatmul.mubr.bf16.gmra.mxu0 %v3874_v24 }
 0x270   : > { %3648 = vmatprep.mubr.bf16.mxu1 %v3859_v31  ;;  %3696 = vmatprep.mubr.bf16.mxu0 %v3875_v32 }
 0x277   : > { %3649 = vmatmul.mubr.bf16.gmra.mxu1 %v3861_v22  ;;  %3697 = vmatmul.mubr.bf16.gmra.mxu0 %v3876_v33 }
 0x278   : > { %3652 = vmatprep.mubr.bf16.mxu1 %v3865_v25 }
 0x27f   : > { %3653 = vmatmul.mubr.bf16.gmra.mxu1 %v3867_v34 }
 0x280   : > { %3700 = vmatprep.mubr.bf16.mxu1 %v3877_v23 }
 0x287   : > { %3701 = vmatmul.mubr.bf16.vlgmr.msra.gmra.mxu1 %v3878_v35 }
 0x2c7   : > { %v3530_v36 = vpop.f32.mrf.mxu1  ;;  %v3578_v37 = vpop.f32.mrf.mxu0 }
 0x2c9   : > { %v1138_v38 = vpop.f32.mrf.mxu1  ;;  %v1523_v39 = vpop.f32.mrf.mxu0 }
 0x2ca   : > { %2711 = vxpose.xlu0.b32.start [1/16] %v1523_v39, 128  ;;  %2647 = vxpose.xlu1.b32.start [1/16] %v1138_v38, 128 }
 0x2cb   : > { %v3531_v41 = vpop.f32.mrf.mxu1  ;;  %v3579_v42 = vpop.f32.mrf.mxu0 }
 0x2cd   : > { %v1141_v45 = vpop.f32.mrf.mxu1  ;;  %v1526_v49 = vpop.f32.mrf.mxu0 }
 0x2ce   : > { %2712 = vxpose.xlu0.b32.cont [2/16] %v1526_v49, 128  ;;  %2648 = vxpose.xlu1.b32.cont [2/16] %v1141_v45, 128 }
 0x2cf   : > { %v3534_v50 = vpop.f32.mrf.mxu1  ;;  %v3582_v54 = vpop.f32.mrf.mxu0 }
 0x2d1   : > { %v1154_v55 = vpop.f32.mrf.mxu1  ;;  %v1539_v57 = vpop.f32.mrf.mxu0 }
 0x2d2   : > { %2713 = vxpose.xlu0.b32.cont [3/16] %v3578_v37, 128  ;;  %2649 = vxpose.xlu1.b32.cont [3/16] %v3530_v36, 128 }
 0x2d3   : > { %v3535_v56 = vpop.f32.mrf.mxu1  ;;  %v3583_v60 = vpop.f32.mrf.mxu0 }
 0x2d5   : > { %v1157_v43 = vpop.f32.mrf.mxu1  ;;  %v1542_v63 = vpop.f32.mrf.mxu0 }
 0x2d6   : > { %2714 = vxpose.xlu0.b32.cont [4/16] %v3579_v42, 128  ;;  %2650 = vxpose.xlu1.b32.cont [4/16] %v3531_v41, 128 }
 0x2d7   : > { %v3538_v59 = vpop.f32.mrf.mxu1  ;;  %v3586_v3 = vpop.f32.mrf.mxu0 }
 0x2d9   : > { %v1170_v61 = vpop.f32.mrf.mxu1  ;;  %v1555_v6 = vpop.f32.mrf.mxu0 }
 0x2da   : > { %2715 = vxpose.xlu0.b32.cont [5/16] %v1539_v57, 128  ;;  %2651 = vxpose.xlu1.b32.cont [5/16] %v1154_v55, 128 }
 0x2db   : > { %v3539_v62 = vpop.f32.mrf.mxu1  ;;  %v3587_v9 = vpop.f32.mrf.mxu0 }
 0x2dd   : > { %v1173_v0 = vpop.f32.mrf.mxu1  ;;  %v1558_v12 = vpop.f32.mrf.mxu0 }
 0x2de   : > { %2716 = vxpose.xlu0.b32.cont [6/16] %v1542_v63, 128  ;;  %2652 = vxpose.xlu1.b32.cont [6/16] %v1157_v43, 128 }
 0x2df   : > { %v3542_v2 = vpop.f32.mrf.mxu1  ;;  %v3590_v53 = vpop.f32.mrf.mxu0 }
 0x2e1   : > { %v1186_v46 = vpop.f32.mrf.mxu1  ;;  %v1571_v16 = vpop.f32.mrf.mxu0 }
 0x2e2   : > { %2717 = vxpose.xlu0.b32.cont [7/16] %v3582_v54, 128  ;;  %2653 = vxpose.xlu1.b32.cont [7/16] %v3534_v50, 128 }
 0x2e3   : > { %v3543_v4 = vpop.f32.mrf.mxu1  ;;  %v3591_v18 = vpop.f32.mrf.mxu0 }
 0x2e5   : > { %v1189_v7 = vpop.f32.mrf.mxu1  ;;  %v1574_v10 = vpop.f32.mrf.mxu0 }
 0x2e6   : > { %2718 = vxpose.xlu0.b32.cont [8/16] %v3583_v60, 128  ;;  %2654 = vxpose.xlu1.b32.cont [8/16] %v3535_v56, 128 }
 0x2e7   : > { %v3546_v8 = vpop.f32.mrf.mxu1  ;;  %v3594_v58 = vpop.f32.mrf.mxu0 }
 0x2e9   : > { %v1202_v11 = vpop.f32.mrf.mxu1  ;;  %v1587_v28 = vpop.f32.mrf.mxu0 }
 0x2ea   : > { %2719 = vxpose.xlu0.b32.cont [9/16] %v1555_v6, 128  ;;  %2655 = vxpose.xlu1.b32.cont [9/16] %v1170_v61, 128 }
 0x2eb   : > { %v3547_v40 = vpop.f32.mrf.mxu1  ;;  %v3595_v24 = vpop.f32.mrf.mxu0 }
 0x2ed   : > { %v1205_v13 = vpop.f32.mrf.mxu1  ;;  %v1590_v22 = vpop.f32.mrf.mxu0 }
 0x2ee   : > { %2720 = vxpose.xlu0.b32.cont [10/16] %v1558_v12, 128  ;;  %2656 = vxpose.xlu1.b32.cont [10/16] %v1173_v0, 128 }
 0x2ef   : > { %v3550_v51 = vpop.f32.mrf.mxu1  ;;  %v3598_v25 = vpop.f32.mrf.mxu0 }
 0x2f1   : > { %v1218_v14 = vpop.f32.mrf.mxu1  ;;  %v1603_v23 = vpop.f32.mrf.mxu0 }
 0x2f2   : > { %2721 = vxpose.xlu0.b32.cont [11/16] %v3586_v3, 128  ;;  %2657 = vxpose.xlu1.b32.cont [11/16] %v3538_v59, 128 }
 0x2f3   : > { %v3551_v15 = vpop.f32.mrf.mxu1  ;;  %v3599_v36 = vpop.f32.mrf.mxu0 }
 0x2f5   : > { %v1221_v17 = vpop.f32.mrf.mxu1  ;;  %v1606_v38 = vpop.f32.mrf.mxu0 }
 0x2f6   : > { %2722 = vxpose.xlu0.b32.cont [12/16] %v3587_v9, 128  ;;  %2658 = vxpose.xlu1.b32.cont [12/16] %v3539_v62, 128 }
 0x2f7   : > { %v4409_v1 = vpop.f32.mrf.mxu1  ;;  %v3602_v41 = vpop.f32.mrf.mxu0 }
 0x2f9   : > { %v1234_v20 = vpop.f32.mrf.mxu1  ;;  %v1619_v45 = vpop.f32.mrf.mxu0 }
 0x2fa   : > { %2723 = vxpose.xlu0.b32.cont [13/16] %v1571_v16, 128  ;;  %2659 = vxpose.xlu1.b32.cont [13/16] %v1186_v46, 128 }
 0x2fb   : > { %v4411_v5 = vpop.f32.mrf.mxu1  ;;  %v3603_v50 = vpop.f32.mrf.mxu0 }
 0x2fd   : > { %v1237_v21 = vpop.f32.mrf.mxu1  ;;  %v1622_v55 = vpop.f32.mrf.mxu0 }
 0x2fe   : > { %2724 = vxpose.xlu0.b32.cont [14/16] %v1574_v10, 128  ;;  %2660 = vxpose.xlu1.b32.cont [14/16] %v1189_v7, 128 }
 0x2ff   : > { %v4413_v26 = vpop.f32.mrf.mxu1  ;;  %v3606_v57 = vpop.f32.mrf.mxu0 }
 0x301   : > { %v1250_v19 = vpop.f32.mrf.mxu1  ;;  %v1635_v59 = vpop.f32.mrf.mxu0 }
 0x302   : > { %2725 = vxpose.xlu0.b32.cont [15/16] %v3590_v53, 128  ;;  %2661 = vxpose.xlu1.b32.cont [15/16] %v3542_v2, 128 }
 0x303   : > { %v4415_v27 = vpop.f32.mrf.mxu1  ;;  %v3607_v61 = vpop.f32.mrf.mxu0 }
 0x305   : > { %v1253_v29 = vpop.f32.mrf.mxu1  ;;  %v1638_v63 = vpop.f32.mrf.mxu0 }
 0x306   : > { %2726 = vxpose.xlu0.b32.end [16/16] %v3591_v18, 128  ;;  %2662 = vxpose.xlu1.b32.end [16/16] %v3543_v4, 128 }
 0x307   : > { %v4417_v30 = vpop.f32.mrf.mxu1  ;;  %v4451_v3 = vpop.f32.mrf.mxu0 }
 0x309   : > { %v4419_v31 = vpop.f32.mrf.mxu1  ;;  %v4454_v4 = vpop.f32.mrf.mxu0 }
 0x30a   : > { %2743 = vxpose.xlu1.b32.start [1/16] %v1587_v28, 128  ;;  %2679 = vxpose.xlu0.b32.start [1/16] %v1202_v11, 128 }
 0x30b   : > { %v4421_v32 = vpop.f32.mrf.mxu1  ;;  %v4457_v9 = vpop.f32.mrf.mxu0 }
 0x30d   : > { %v4423_v33 = vpop.f32.mrf.mxu1  ;;  %v4460_v53 = vpop.f32.mrf.mxu0 }
 0x30e   : > { %2744 = vxpose.xlu1.b32.cont [2/16] %v1590_v22, 128  ;;  %2680 = vxpose.xlu0.b32.cont [2/16] %v1205_v13, 128 }
 0x30f   : > { %v4425_v34 = vpop.f32.mrf.mxu1  ;;  %v4463_v18 = vpop.f32.mrf.mxu0 }
 0x311   : > { %v4427_v35 = vpop.f32.mrf.mxu1 }
 0x312   : > { %2745 = vxpose.xlu1.b32.cont [3/16] %v3594_v58, 128  ;;  %2681 = vxpose.xlu0.b32.cont [3/16] %v3546_v8, 128  ;;  %v4466_v58 = vpop.f32.mrf.mxu0 }
 0x313   : > { %v4429_v37 = vpop.f32.mrf.mxu1 }
 0x315   : > { %v4431_v39 = vpop.f32.mrf.mxu1 }
 0x316   : > { %2746 = vxpose.xlu1.b32.cont [4/16] %v3595_v24, 128  ;;  %2682 = vxpose.xlu0.b32.cont [4/16] %v3547_v40, 128 }
 0x317   : > { %v4433_v42 = vpop.f32.mrf.mxu1 }
 0x319   : > { %v4435_v49 = vpop.f32.mrf.mxu1 }
 0x31a   : > { %2747 = vxpose.xlu1.b32.cont [5/16] %v1603_v23, 128  ;;  %2683 = vxpose.xlu0.b32.cont [5/16] %v1218_v14, 128 }
 0x31b   : > { %v4437_v54 = vpop.f32.mrf.mxu1 }
 0x31d   : > { %v4439_v56 = vpop.f32.mrf.mxu1 }
 0x31e   : > { %2748 = vxpose.xlu1.b32.cont [6/16] %v1606_v38, 128  ;;  %2684 = vxpose.xlu0.b32.cont [6/16] %v1221_v17, 128 }
 0x31f   : > { %v4441_v43 = vpop.f32.mrf.mxu1 }
 0x321   : > { %v4444_v60 = vpop.f32.mrf.mxu1 }
 0x322   : > { %2749 = vxpose.xlu1.b32.cont [7/16] %v3598_v25, 128  ;;  %2685 = vxpose.xlu0.b32.cont [7/16] %v3550_v51, 128 }
 0x323   : > { %v4447_v62 = vpop.f32.mrf.mxu1 }
 0x325   : > { %v4449_v0 = vpop.f32.mrf.mxu1 }
 0x326   : > { %2750 = vxpose.xlu1.b32.cont [8/16] %v3599_v36, 128  ;;  %2686 = vxpose.xlu0.b32.cont [8/16] %v3551_v15, 128 }
 0x327   : > { %v3642_v2 = vpop.f32.mrf.mxu1 }
 0x329   : > { %v1972_v46 = vpop.f32.mrf.mxu1 }
 0x32a   : > { %2751 = vxpose.xlu1.b32.cont [9/16] %v1619_v45, 128  ;;  %2687 = vxpose.xlu0.b32.cont [9/16] %v1234_v20, 128 }
 0x32b   : > { %v3643_v8 = vpop.f32.mrf.mxu1 }
 0x32d   : > { %v1975_v51 = vpop.f32.mrf.mxu1 }
 0x32e   : > { %2752 = vxpose.xlu1.b32.cont [10/16] %v1622_v55, 128  ;;  %2688 = vxpose.xlu0.b32.cont [10/16] %v1237_v21, 128 }
 0x332   : > { %2753 = vxpose.xlu1.b32.cont [11/16] %v3602_v41, 128  ;;  %2689 = vxpose.xlu0.b32.cont [11/16] %v4409_v1, 128  ;;  %v3646_v1 = vpop.f32.mrf.mxu1 }
 0x336   : > { %2754 = vxpose.xlu1.b32.cont [12/16] %v3603_v50, 128  ;;  %2690 = vxpose.xlu0.b32.cont [12/16] %v4411_v5, 128 }
 0x33a   : > { %2755 = vxpose.xlu1.b32.cont [13/16] %v1635_v59, 128  ;;  %2691 = vxpose.xlu0.b32.cont [13/16] %v1250_v19, 128 }
 0x33e   : > { %2756 = vxpose.xlu1.b32.cont [14/16] %v1638_v63, 128  ;;  %2692 = vxpose.xlu0.b32.cont [14/16] %v1253_v29, 128 }
 0x342   : > { %2757 = vxpose.xlu1.b32.cont [15/16] %v3606_v57, 128  ;;  %2693 = vxpose.xlu0.b32.cont [15/16] %v4413_v26, 128  ;;  %v1988_v26 = vpop.f32.mrf.mxu1 }
 0x344   : > { %v3647_v24 = vpop.f32.mrf.mxu1 }
 0x346   : > { %v2727_v6 = vpop.trf.xlu0  ;;  %2758 = vxpose.xlu1.b32.end [16/16] %v3607_v61, 128  ;;  %v2663_v7 = vpop.trf.xlu1  ;;  %2694 = vxpose.xlu0.b32.end [16/16] %v4415_v27, 128 }
 0x347   : > { %v1991_v23 = vpop.f32.mrf.mxu1 }
 0x349   : > { %v3650_v50 = vpop.f32.mrf.mxu1 }
 0x34a   : > { %v2728_v11 = vpop.trf.xlu0  ;;  %v2664_v40 = vpop.trf.xlu1  ;;  %2775 = vxpose.xlu0.b32.start [1/16] %v4419_v31, 128  ;;  %2807 = vxpose.xlu1.b32.start [1/16] %v1972_v46, 128 }
 0x34b   : > { %v2945_v12 = vmax.f32 %v2727_v6, %v2728_v11  ;;  %v2903_v13 = vmax.f32 %v2663_v7, %v2664_v40  ;;  %v4469_v31 = vpop.f32.mrf.mxu0  ;;  %v2004_v63 = vpop.f32.mrf.mxu1 }
 0x34d   : > { %v4472_v36 = vpop.f32.mrf.mxu0 }
 0x34e   : > { %v2729_v14 = vpop.trf.xlu0  ;;  %v2665_v15 = vpop.trf.xlu1  ;;  %2776 = vxpose.xlu0.b32.cont [2/16] %v4423_v33, 128  ;;  %2808 = vxpose.xlu1.b32.cont [2/16] %v1975_v51, 128 }
 0x34f   : > { %v2946_v16 = vmax.f32 %v2945_v12, %v2729_v14  ;;  %v2904_v17 = vmax.f32 %v2903_v13, %v2665_v15  ;;  %v4475_v55 = vpop.f32.mrf.mxu0 }
 0x352   : > { %v2730_v20 = vpop.trf.xlu0  ;;  %v2666_v5 = vpop.trf.xlu1  ;;  %2777 = vxpose.xlu0.b32.cont [3/16] %v4417_v30, 128  ;;  %2809 = vxpose.xlu1.b32.cont [3/16] %v3642_v2, 128 }
 0x353   : > { %v2947_v10 = vmax.f32 %v2946_v16, %v2730_v20  ;;  %v2905_v21 = vmax.f32 %v2904_v17, %v2666_v5  ;;  %v4478_v2 = vpop.f32.mrf.mxu0 }
 0x355   : > { %v4481_v11 = vpop.f32.mrf.mxu0 }
 0x356   : > { %v2731_v19 = vpop.trf.xlu0  ;;  %v2667_v27 = vpop.trf.xlu1  ;;  %2778 = vxpose.xlu0.b32.cont [4/16] %v4421_v32, 128  ;;  %2810 = vxpose.xlu1.b32.cont [4/16] %v3643_v8, 128 }
 0x357   : > { %v2948_v28 = vmax.f32 %v2947_v10, %v2731_v19  ;;  %v2906_v29 = vmax.f32 %v2905_v21, %v2667_v27  ;;  %v3651_v8 = vpop.f32.mrf.mxu1  ;;  %v4484_v14 = vpop.f32.mrf.mxu0 }
 0x359   : > { %v2007_v51 = vpop.f32.mrf.mxu1  ;;  %v4487_v20 = vpop.f32.mrf.mxu0 }
 0x35a   : > { %v2732_v22 = vpop.trf.xlu0  ;;  %v2668_v33 = vpop.trf.xlu1  ;;  %2779 = vxpose.xlu0.b32.cont [5/16] %v4427_v35, 128  ;;  %2811 = vxpose.xlu1.b32.cont [5/16] %v1988_v26, 128 }
 0x35b   : > { %v2949_v30 = vmax.f32 %v2948_v28, %v2732_v22  ;;  %v2907_v25 = vmax.f32 %v2906_v29, %v2668_v33  ;;  %v4490_v19 = vpop.f32.mrf.mxu0 }
 0x35d   : > { %v4493_v22 = vpop.f32.mrf.mxu0 }
 0x35e   : > { %v2733_v38 = vpop.trf.xlu0  ;;  %v2669_v41 = vpop.trf.xlu1  ;;  %2780 = vxpose.xlu0.b32.cont [6/16] %v4431_v39, 128  ;;  %2812 = vxpose.xlu1.b32.cont [6/16] %v1991_v23, 128 }
 0x35f   : > { %v2950_v32 = vmax.f32 %v2949_v30, %v2733_v38  ;;  %v2908_v45 = vmax.f32 %v2907_v25, %v2669_v41  ;;  %v4496_v38 = vpop.f32.mrf.mxu0 }
 0x362   : > { %v2734_v57 = vpop.trf.xlu0  ;;  %v2670_v59 = vpop.trf.xlu1  ;;  %2781 = vxpose.xlu0.b32.cont [7/16] %v4425_v34, 128  ;;  %2813 = vxpose.xlu1.b32.cont [7/16] %v3646_v1, 128 }
 0x363   : > { %v2951_v35 = vmax.f32 %v2950_v32, %v2734_v57  ;;  %v2909_v61 = vmax.f32 %v2908_v45, %v2670_v59  ;;  %v3654_v1 = vpop.f32.mrf.mxu1 }
 0x365   : > { %v2020_v26 = vpop.f32.mrf.mxu1 }
 0x366   : > { %v2735_v46 = vpop.trf.xlu0  ;;  %v2671_v6 = vpop.trf.xlu1  ;;  %2782 = vxpose.xlu0.b32.cont [8/16] %v4429_v37, 128  ;;  %2814 = vxpose.xlu1.b32.cont [8/16] %v3647_v24, 128 }
 0x367   : > { %v2952_v39 = vmax.f32 %v2951_v35, %v2735_v46  ;;  %v2910_v7 = vmax.f32 %v2909_v61, %v2671_v6  ;;  %v3655_v24 = vpop.f32.mrf.mxu1 }
 0x369   : > { %v2023_v23 = vpop.f32.mrf.mxu1 }
 0x36a   : > { %v2736_v40 = vpop.trf.xlu0  ;;  %v2672_v12 = vpop.trf.xlu1  ;;  %2783 = vxpose.xlu0.b32.cont [9/16] %v4435_v49, 128  ;;  %2815 = vxpose.xlu1.b32.cont [9/16] %v2004_v63, 128 }
 0x36b   : > { %v2953_v34 = vmax.f32 %v2952_v39, %v2736_v40  ;;  %v2911_v13 = vmax.f32 %v2910_v7, %v2672_v12 }
 0x36e   : > { %v2737_v15 = vpop.trf.xlu0  ;;  %v2673_v16 = vpop.trf.xlu1  ;;  %2784 = vxpose.xlu0.b32.cont [10/16] %v4439_v56, 128  ;;  %2816 = vxpose.xlu1.b32.cont [10/16] %v2007_v51, 128 }
 0x36f   : > { %v2954_v37 = vmax.f32 %v2953_v34, %v2737_v15  ;;  %v2912_v17 = vmax.f32 %v2911_v13, %v2673_v16 }
 0x372   : > { %v2738_v5 = vpop.trf.xlu0  ;;  %v2674_v10 = vpop.trf.xlu1  ;;  %2785 = vxpose.xlu0.b32.cont [11/16] %v4433_v42, 128  ;;  %2817 = vxpose.xlu1.b32.cont [11/16] %v3650_v50, 128 }
 0x373   : > { %v2955_v49 = vmax.f32 %v2954_v37, %v2738_v5  ;;  %v2913_v21 = vmax.f32 %v2912_v17, %v2674_v10  ;;  %v3690_v50 = vpop.f32.mrf.mxu0 }
 0x375   : > { %v2357_v61 = vpop.f32.mrf.mxu0 }
 0x376   : > { %v2739_v27 = vpop.trf.xlu0  ;;  %v2675_v28 = vpop.trf.xlu1  ;;  %2786 = vxpose.xlu0.b32.cont [12/16] %v4437_v54, 128  ;;  %2818 = vxpose.xlu1.b32.cont [12/16] %v3651_v8, 128 }
 0x377   : > { %v2956_v56 = vmax.f32 %v2955_v49, %v2739_v27  ;;  %v2914_v29 = vmax.f32 %v2913_v21, %v2675_v28 }
 0x37a   : > { %v2740_v33 = vpop.trf.xlu0  ;;  %v2676_v30 = vpop.trf.xlu1  ;;  %2787 = vxpose.xlu0.b32.cont [13/16] %v4444_v60, 128  ;;  %2819 = vxpose.xlu1.b32.cont [13/16] %v2020_v26, 128 }
 0x37b   : > { %v2957_v42 = vmax.f32 %v2956_v56, %v2740_v33  ;;  %v2915_v25 = vmax.f32 %v2914_v29, %v2676_v30 }
 0x37e   : > { %v2741_v41 = vpop.trf.xlu0  ;;  %v2677_v32 = vpop.trf.xlu1  ;;  %2788 = vxpose.xlu0.b32.cont [14/16] %v4449_v0, 128  ;;  %2820 = vxpose.xlu1.b32.cont [14/16] %v2023_v23, 128 }
 0x37f   : > { %v2958_v54 = vmax.f32 %v2957_v42, %v2741_v41  ;;  %v2916_v45 = vmax.f32 %v2915_v25, %v2677_v32  ;;  %v3691_v0 = vpop.f32.mrf.mxu0 }
 0x382   : > { %v2742_v57 = vpop.trf.xlu0  ;;  %v2678_v59 = vpop.trf.xlu1  ;;  %2789 = vxpose.xlu0.b32.cont [15/16] %v4441_v43, 128  ;;  %2821 = vxpose.xlu1.b32.cont [15/16] %v3654_v1, 128 }
 0x383   : > { %v4500_v60 = vmax.f32 %v2958_v54, %v2742_v57  ;;  %v4502_v35 = vmax.f32 %v2916_v45, %v2678_v59  ;;  %v2360_v43 = vpop.f32.mrf.mxu0 }
 0x385   : > { %v3694_v51 = vpop.f32.mrf.mxu0 }
 0x386   : > { %v2759_v63 = vpop.trf.xlu1  ;;  %v2695_v46 = vpop.trf.xlu0  ;;  %2790 = vxpose.xlu0.b32.end [16/16] %v4447_v62, 128  ;;  %2822 = vxpose.xlu1.b32.end [16/16] %v3655_v24, 128 }
 0x38a   : > { %v2760_v6 = vpop.trf.xlu1  ;;  %v2696_v39 = vpop.trf.xlu0  ;;  %2839 = vxpose.xlu0.b32.start [1/16] %v4454_v4, 128  ;;  %2871 = vxpose.xlu1.b32.start [1/16] %v2357_v61, 128 }
 0x38b   : > { %v2966_v7 = vmax.f32 %v2759_v63, %v2760_v6  ;;  %v2924_v8 = vmax.f32 %v2695_v46, %v2696_v39  ;;  %v2373_v4 = vpop.f32.mrf.mxu0 }
 0x38e   : > { %v2761_v40 = vpop.trf.xlu1  ;;  %v2697_v12 = vpop.trf.xlu0  ;;  %2840 = vxpose.xlu0.b32.cont [2/16] %v4460_v53, 128  ;;  %2872 = vxpose.xlu1.b32.cont [2/16] %v2360_v43, 128  ;;  %v2960_v43 = vrot.slane %v4500_v60, 4 }
 0x38f   : > { %v2967_v34 = vmax.f32 %v2966_v7, %v2761_v40  ;;  %v2925_v13 = vmax.f32 %v2924_v8, %v2697_v12  ;;  %v3695_v53 = vpop.f32.mrf.mxu0  ;;  %v2918_v40 = vrot.slane %v4502_v35, 4 }
 0x392   : > { %v2762_v15 = vpop.trf.xlu1  ;;  %v2698_v62 = vpop.trf.xlu0  ;;  %2841 = vxpose.xlu0.b32.cont [3/16] %v4451_v3, 128  ;;  %2873 = vxpose.xlu1.b32.cont [3/16] %v3690_v50, 128 }
 0x393   : > { %v2968_v16 = vmax.f32 %v2967_v34, %v2762_v15  ;;  %v2926_v37 = vmax.f32 %v2925_v13, %v2698_v62  ;;  %v2376_v3 = vpop.f32.mrf.mxu0  ;;  %v2961_v15 = vmax.f32 %v4500_v60, %v2960_v43 }
 0x396   : > { %v2763_v17 = vpop.trf.xlu1  ;;  %v2699_v1 = vpop.trf.xlu0  ;;  %2842 = vxpose.xlu0.b32.cont [4/16] %v4457_v9, 128  ;;  %2874 = vxpose.xlu1.b32.cont [4/16] %v3691_v0, 128 }
 0x397   : > { %v2969_v5 = vmax.f32 %v2968_v16, %v2763_v17  ;;  %v2927_v10 = vmax.f32 %v2926_v37, %v2699_v1  ;;  %v3698_v9 = vpop.f32.mrf.mxu0  ;;  %v2962_v1 = vrot.slane %v2961_v15, 2 }
 0x399   : > { %v2963_v60 = vmax.f32 %v2961_v15, %v2962_v1 }
 0x39a   : > { %v2764_v49 = vpop.trf.xlu1  ;;  %v2700_v21 = vpop.trf.xlu0  ;;  %2843 = vxpose.xlu0.b32.cont [5/16] %v4466_v58, 128  ;;  %2875 = vxpose.xlu1.b32.cont [5/16] %v2373_v4, 128 }
 0x39b   : > { %v2970_v26 = vmax.f32 %v2969_v5, %v2764_v49  ;;  %v2928_v27 = vmax.f32 %v2927_v10, %v2700_v21  ;;  %v2389_v58 = vpop.f32.mrf.mxu0 }
 0x39e   : > { %v2765_v28 = vpop.trf.xlu1  ;;  %v2701_v56 = vpop.trf.xlu0  ;;  %2844 = vxpose.xlu0.b32.cont [6/16] %v4472_v36, 128  ;;  %2876 = vxpose.xlu1.b32.cont [6/16] %v2376_v3, 128 }
 0x39f   : > { %v2971_v29 = vmax.f32 %v2970_v26, %v2765_v28  ;;  %v2929_v24 = vmax.f32 %v2928_v27, %v2701_v56  ;;  %v3699_v36 = vpop.f32.mrf.mxu0  ;;  %v4527_v56 = vld [vmem:[%s4609_s6] sm:$0xff] }
 0x3a2   : > { %v2766_v33 = vpop.trf.xlu1  ;;  %v2702_v30 = vpop.trf.xlu0  ;;  %2845 = vxpose.xlu0.b32.cont [7/16] %v4463_v18, 128  ;;  %2877 = vxpose.xlu1.b32.cont [7/16] %v3694_v51, 128 }
 0x3a3   : > { %v2972_v42 = vmax.f32 %v2971_v29, %v2766_v33  ;;  %v2930_v25 = vmax.f32 %v2929_v24, %v2702_v30  ;;  %v2392_v18 = vpop.f32.mrf.mxu0 }
 0x3a6   : > { %v2767_v23 = vpop.trf.xlu1  ;;  %v2703_v41 = vpop.trf.xlu0  ;;  %2846 = vxpose.xlu0.b32.cont [8/16] %v4469_v31, 128  ;;  %2878 = vxpose.xlu1.b32.cont [8/16] %v3695_v53, 128 }
 0x3a7   : > { %v2973_v32 = vmax.f32 %v2972_v42, %v2767_v23  ;;  %v2931_v54 = vmax.f32 %v2930_v25, %v2703_v41  ;;  %v3702_v31 = vpop.f32.mrf.mxu1  ;;  %v3087_v42 = vsub.s32 3, %v4225_v44  ;;  %v3076_v41 = vrot.slane %v4527_v56, %v496_v48 }
 0x3aa   : > { %v2768_v45 = vpop.trf.xlu1  ;;  %v2704_v50 = vpop.trf.xlu0  ;;  %2847 = vxpose.xlu0.b32.cont [9/16] %v4478_v2, 128  ;;  %2879 = vxpose.xlu1.b32.cont [9/16] %v2389_v58, 128 }
 0x3ab   : > { %v2974_v57 = vmax.f32 %v2973_v32, %v2768_v45  ;;  %v2932_v59 = vmax.f32 %v2931_v54, %v2704_v50  ;;  %v2405_v2 = vpop.f32.mrf.mxu1 }
 0x3ad   : > { %v3703_v51 = vpop.f32.mrf.mxu1 }
 0x3ae   : > { %v2769_v61 = vpop.trf.xlu1  ;;  %v2705_v63 = vpop.trf.xlu0  ;;  %2848 = vxpose.xlu0.b32.cont [10/16] %v4484_v14, 128  ;;  %2880 = vxpose.xlu1.b32.cont [10/16] %v2392_v18, 128 }
 0x3af   : > { %v2975_v46 = vmax.f32 %v2974_v57, %v2769_v61  ;;  %v2933_v0 = vmax.f32 %v2932_v59, %v2705_v63  ;;  %v2408_v17 = vpop.f32.mrf.mxu1  ;;  %v3080_v63 = vrot.slane %v4527_v56, %v540_v47 }
 0x3b2   : > { %v2770_v6 = vpop.trf.xlu1  ;;  %v2706_v39 = vpop.trf.xlu0  ;;  %2849 = vxpose.xlu0.b32.cont [11/16] %v4475_v55, 128  ;;  %2881 = vxpose.xlu1.b32.cont [11/16] %v3698_v9, 128  ;;  %v2919_v55 = vmax.f32 %v4502_v35, %v2918_v40 }
 0x3b3   : > { %v2976_v7 = vmax.f32 %v2975_v46, %v2770_v6  ;;  %v2934_v8 = vmax.f32 %v2933_v0, %v2706_v39 }
 0x3b4   : > { %v2920_v5 = vrot.slane %v2919_v55, 2 }
 0x3b6   : > { %v2771_v12 = vpop.trf.xlu1  ;;  %v2707_v34 = vpop.trf.xlu0  ;;  %2850 = vxpose.xlu0.b32.cont [12/16] %v4481_v11, 128  ;;  %2882 = vxpose.xlu1.b32.cont [12/16] %v3699_v36, 128  ;;  %v2921_v21 = vmax.f32 %v2919_v55, %v2920_v5 }
 0x3b7   : > { %v2977_v14 = vmax.f32 %v2976_v7, %v2771_v12  ;;  %v2935_v13 = vmax.f32 %v2934_v8, %v2707_v34 }
 0x3b8   : > { %v2922_v29 = vrot.slane %v2921_v21, 1 }
 0x3ba   : > { %v2772_v62 = vpop.trf.xlu1  ;;  %v2708_v16 = vpop.trf.xlu0  ;;  %2851 = vxpose.xlu0.b32.cont [13/16] %v4490_v19, 128  ;;  %2883 = vxpose.xlu1.b32.cont [13/16] %v2405_v2, 128  ;;  %v2923_v32 = vmax.f32 %v2921_v21, %v2922_v29 }
 0x3bb   : > { %v2978_v37 = vmax.f32 %v2977_v14, %v2772_v62  ;;  %v2936_v4 = vmax.f32 %v2935_v13, %v2708_v16 }
 0x3be   : > { %v2773_v10 = vpop.trf.xlu1  ;;  %v2709_v11 = vpop.trf.xlu0  ;;  %2852 = vxpose.xlu0.b32.cont [14/16] %v4496_v38, 128  ;;  %2884 = vxpose.xlu1.b32.cont [14/16] %v2408_v17, 128  ;;  %v2964_v38 = vrot.slane %v2963_v60, 1 }
 0x3bf   : > { %v2979_v53 = vmax.f32 %v2978_v37, %v2773_v10  ;;  %v2937_v49 = vmax.f32 %v2936_v4, %v2709_v11 }
 0x3c0   : > { %v2965_v23 = vmax.f32 %v2963_v60, %v2964_v38 }
 0x3c2   : > { %v2774_v35 = vpop.trf.xlu1  ;;  %v2710_v26 = vpop.trf.xlu0  ;;  %2853 = vxpose.xlu0.b32.cont [15/16] %v4487_v20, 128  ;;  %2885 = vxpose.xlu1.b32.cont [15/16] %v3702_v31, 128  ;;  %v3084_v20 = vrot.slane %v4527_v56, %v592_v52  ;;  %v3088_v52 = vrot.slane %v4527_v56, %v3087_v42  ;;  %v3113_v31 = vadd.f32 %v3076_v41, %v2923_v32 }
 0x3c3   : > { %v2980_v19 = vmax.f32 %v2979_v53, %v2774_v35  ;;  %v2938_v27 = vmax.f32 %v2937_v49, %v2710_v26 }
 0x3c4   : > { %v3115_v0 = vadd.f32 %v3084_v20, %v2965_v23  ;;  %v3121_v14 = vmax.f32 %v3113_v31, 0.0 }
 0x3c5   : > { %v2981_v3 = vrot.slane %v2980_v19, 4  ;;  %v2939_v28 = vrot.slane %v2938_v27, 4 }
 0x3c6   : > { %2854 = vxpose.xlu0.b32.end [16/16] %v4493_v22, 128  ;;  %v2791_v24 = vpop.trf.xlu0  ;;  %v2823_v9 = vpop.trf.xlu1  ;;  %2886 = vxpose.xlu1.b32.end [16/16] %v3703_v51, 128  ;;  %v3993_v22 = vmov 1966171168   ;;  %v3123_v34 = vmax.f32 %v3115_v0, 0.0 }
 0x3c7   : > { %v2982_v33 = vmax.f32 %v2980_v19, %v2981_v3  ;;  %v2940_v30 = vmax.f32 %v2938_v27, %v2939_v28  ;;  %v3142_v54 = vunpack.c.l.s4 %v3993_v22 }
 0x3c9   : > { %v2983_v25 = vrot.slane %v2982_v33, 2  ;;  %v2941_v58 = vrot.slane %v2940_v30, 2  ;;  %v3143_v48 = vunpack.c.0.s8 %v3142_v54 }
 0x3ca   : > { %v2792_v36 = vpop.trf.xlu0  ;;  %v2824_v45 = vpop.trf.xlu1 }
 0x3cb   : > { %v2984_v50 = vmax.f32 %v2982_v33, %v2983_v25  ;;  %v2942_v57 = vmax.f32 %v2940_v30, %v2941_v58  ;;  %v2987_v59 = vmax.f32 %v2791_v24, %v2792_v36  ;;  %v3008_v18 = vmax.f32 %v2823_v9, %v2824_v45 }
 0x3cc   : > { %v4542_v13 = vsub.s32 %v3143_v48, %v4225_v44 }
 0x3cd   : > { %v2985_v61 = vrot.slane %v2984_v50, 1  ;;  %v2943_v46 = vrot.slane %v2942_v57, 1 }
 0x3ce   : > { %v2793_v6 = vpop.trf.xlu0  ;;  %v2825_v39 = vpop.trf.xlu1 }
 0x3cf   : > { %v2986_v7 = vmax.f32 %v2984_v50, %v2985_v61  ;;  %v2944_v8 = vmax.f32 %v2942_v57, %v2943_v46  ;;  %v2988_v2 = vmax.f32 %v2987_v59, %v2793_v6  ;;  %v3009_v43 = vmax.f32 %v3008_v18, %v2825_v39 }
 0x3d1   : > { %v3116_v40 = vadd.f32 %v3088_v52, %v2986_v7  ;;  %v3114_v12 = vadd.f32 %v3080_v63, %v2944_v8 }
 0x3d2   : > { %v2794_v51 = vpop.trf.xlu0  ;;  %v2826_v15 = vpop.trf.xlu1 }
 0x3d3   : > { %v3124_v47 = vmax.f32 %v3116_v40, 0.0  ;;  %v3122_v55 = vmax.f32 %v3114_v12, 0.0  ;;  %v2989_v62 = vmax.f32 %v2988_v2, %v2794_v51  ;;  %v3010_v16 = vmax.f32 %v3009_v43, %v2826_v15 }
 0x3d5   : > { %v3138_v37 = vcombine.low %v3123_v34, %v3124_v47  ;;  %v3137_v4 = vcombine.low %v3121_v14, %v3122_v55 }
 0x3d6   : > { %v2795_v17 = vpop.trf.xlu0  ;;  %v2827_v1 = vpop.trf.xlu1 }
 0x3d7   : > { %v3154_v5 = vrot.slane %v3138_v37, %v4542_v13  ;;  %v3147_v10 = vrot.slane %v3137_v4, %v4542_v13  ;;  %v2990_v11 = vmax.f32 %v2989_v62, %v2795_v17  ;;  %v3011_v53 = vmax.f32 %v3010_v16, %v2827_v1 }
 0x3d8   : > { %v3091_v62 = vsub.s32 4, %v4225_v44  ;;  %v3095_v37 = vsub.s32 5, %v4225_v44 }
 0x3d9   : > { %v4546_v49 = vcombine.low %v3147_v10, %v3154_v5 }
 0x3da   : > { %v2796_v60 = vpop.trf.xlu0  ;;  %v2828_v21 = vpop.trf.xlu1 }
 0x3db   : > { %v2991_v35 = vmax.f32 %v2990_v11, %v2796_v60  ;;  %v3012_v26 = vmax.f32 %v3011_v53, %v2828_v21  ;;  %v3092_v11 = vrot.slane %v4527_v56, %v3091_v62  ;;  %v3096_v60 = vrot.slane %v4527_v56, %v3095_v37 }
 0x3de   : > { %v2797_v19 = vpop.trf.xlu0  ;;  %v2829_v27 = vpop.trf.xlu1 }
 0x3df   : > { %v2992_v3 = vmax.f32 %v2991_v35, %v2797_v19  ;;  %v3013_v28 = vmax.f32 %v3012_v26, %v2829_v27 }
 0x3e2   : > { %v2798_v38 = vpop.trf.xlu0  ;;  %v2830_v29 = vpop.trf.xlu1 }
 0x3e3   : > { %v2993_v24 = vmax.f32 %v2992_v3, %v2798_v38  ;;  %v3014_v9 = vmax.f32 %v3013_v28, %v2830_v29 }
 0x3e6   : > { %v2799_v33 = vpop.trf.xlu0  ;;  %v2831_v30 = vpop.trf.xlu1 }
 0x3e7   : > { %v2994_v20 = vmax.f32 %v2993_v24, %v2799_v33  ;;  %v3015_v42 = vmax.f32 %v3014_v9, %v2831_v30 }
 0x3ea   : > { %v2800_v25 = vpop.trf.xlu0  ;;  %v2832_v58 = vpop.trf.xlu1 }
 0x3eb   : > { %v2995_v23 = vmax.f32 %v2994_v20, %v2800_v25  ;;  %v3016_v41 = vmax.f32 %v3015_v42, %v2832_v58 }
 0x3ee   : > { %v2801_v32 = vpop.trf.xlu0  ;;  %v2833_v22 = vpop.trf.xlu1 }
 0x3ef   : > { %v2996_v54 = vmax.f32 %v2995_v23, %v2801_v32  ;;  %v3017_v36 = vmax.f32 %v3016_v41, %v2833_v22 }
 0x3f2   : > { %v2802_v45 = vpop.trf.xlu0  ;;  %v2834_v50 = vpop.trf.xlu1 }
 0x3f3   : > { %v2997_v57 = vmax.f32 %v2996_v54, %v2802_v45  ;;  %v3018_v59 = vmax.f32 %v3017_v36, %v2834_v50 }
 0x3f6   : > { %v2803_v18 = vpop.trf.xlu0  ;;  %v2835_v52 = vpop.trf.xlu1 }
 0x3f7   : > { %v2998_v61 = vmax.f32 %v2997_v57, %v2803_v18  ;;  %v3019_v63 = vmax.f32 %v3018_v59, %v2835_v52 }
 0x3fa   : > { %v2804_v46 = vpop.trf.xlu0  ;;  %v2836_v0 = vpop.trf.xlu1 }
 0x3fb   : > { %v2999_v31 = vmax.f32 %v2998_v61, %v2804_v46  ;;  %v3020_v48 = vmax.f32 %v3019_v63, %v2836_v0 }
 0x3fe   : > { %v2805_v6 = vpop.trf.xlu0  ;;  %v2837_v39 = vpop.trf.xlu1 }
 0x3ff   : > { %v3000_v7 = vmax.f32 %v2999_v31, %v2805_v6  ;;  %v3021_v8 = vmax.f32 %v3020_v48, %v2837_v39 }
 0x402   : > { %v2806_v2 = vpop.trf.xlu0  ;;  %v2838_v43 = vpop.trf.xlu1 }
 0x403   : > { %v3001_v40 = vmax.f32 %v3000_v7, %v2806_v2  ;;  %v3022_v12 = vmax.f32 %v3021_v8, %v2838_v43 }
 0x405   : > { %v3002_v34 = vrot.slane %v3001_v40, 4  ;;  %v3023_v14 = vrot.slane %v3022_v12, 4 }
 0x406   : > { %v2855_v51 = vpop.trf.xlu0  ;;  %v2887_v15 = vpop.trf.xlu1 }
 0x407   : > { %v3003_v47 = vmax.f32 %v3001_v40, %v3002_v34  ;;  %v3024_v55 = vmax.f32 %v3022_v12, %v3023_v14 }
 0x409   : > { %v3004_v16 = vrot.slane %v3003_v47, 2  ;;  %v3025_v4 = vrot.slane %v3024_v55, 2 }
 0x40a   : > { %v2856_v17 = vpop.trf.xlu0  ;;  %v2888_v1 = vpop.trf.xlu1 }
 0x40b   : > { %v3005_v5 = vmax.f32 %v3003_v47, %v3004_v16  ;;  %v3026_v10 = vmax.f32 %v3024_v55, %v3025_v4  ;;  %v3029_v36 = vmax.f32 %v2855_v51, %v2856_v17  ;;  %v3050_v45 = vmax.f32 %v2887_v15, %v2888_v1 }
 0x40d   : > { %v3006_v53 = vrot.slane %v3005_v5, 1  ;;  %v3027_v21 = vrot.slane %v3026_v10, 1 }
 0x40e   : > { %v2857_v35 = vpop.trf.xlu0  ;;  %v2889_v26 = vpop.trf.xlu1 }
 0x40f   : > { %v3007_v19 = vmax.f32 %v3005_v5, %v3006_v53  ;;  %v3028_v27 = vmax.f32 %v3026_v10, %v3027_v21  ;;  %v3030_v50 = vmax.f32 %v3029_v36, %v2857_v35  ;;  %v3051_v57 = vmax.f32 %v3050_v45, %v2889_v26 }
 0x411   : > { %v3117_v3 = vadd.f32 %v3092_v11, %v3007_v19  ;;  %v3118_v28 = vadd.f32 %v3096_v60, %v3028_v27 }
 0x412   : > { %v2858_v38 = vpop.trf.xlu0  ;;  %v2890_v29 = vpop.trf.xlu1 }
 0x413   : > { %v3125_v24 = vmax.f32 %v3117_v3, 0.0  ;;  %v3126_v9 = vmax.f32 %v3118_v28, 0.0  ;;  %v3031_v52 = vmax.f32 %v3030_v50, %v2858_v38  ;;  %v3052_v61 = vmax.f32 %v3051_v57, %v2890_v29 }
 0x415   : > { %v4552_v33 = vcombine.low %v3125_v24, %v3126_v9  ;;  %v3099_v9 = vsub.s32 6, %v4225_v44 }
 0x416   : > { %v2859_v30 = vpop.trf.xlu0  ;;  %v2891_v20 = vpop.trf.xlu1 }
 0x417   : > { %v3032_v63 = vmax.f32 %v3031_v52, %v2859_v30  ;;  %v3053_v46 = vmax.f32 %v3052_v61, %v2891_v20  ;;  %v3103_v20 = vsub.s32 7, %v4225_v44  ;;  %v3161_v44 = vrot.slane %v4552_v33, %v4542_v13 }
 0x41a   : > { %v2860_v42 = vpop.trf.xlu0  ;;  %v2892_v25 = vpop.trf.xlu1 }
 0x41b   : > { %v3033_v48 = vmax.f32 %v3032_v63, %v2860_v42  ;;  %v3054_v6 = vmax.f32 %v3053_v46, %v2892_v25 }
 0x41e   : > { %v2861_v58 = vpop.trf.xlu0  ;;  %v2893_v23 = vpop.trf.xlu1 }
 0x41f   : > { %v3034_v39 = vmax.f32 %v3033_v48, %v2861_v58  ;;  %v3055_v7 = vmax.f32 %v3054_v6, %v2893_v23  ;;  %v3100_v23 = vrot.slane %v4527_v56, %v3099_v9 }
 0x422   : > { %v2862_v41 = vpop.trf.xlu0  ;;  %v2894_v32 = vpop.trf.xlu1 }
 0x423   : > { %v3035_v43 = vmax.f32 %v3034_v39, %v2862_v41  ;;  %v3056_v40 = vmax.f32 %v3055_v7, %v2894_v32  ;;  %v3104_v32 = vrot.slane %v4527_v56, %v3103_v20  ;;  %v3177_v56 = vrot.slane %v4546_v49, %v4542_v13 }
 0x426   : > { %v2863_v22 = vpop.trf.xlu0  ;;  %v2895_v54 = vpop.trf.xlu1 }
 0x427   : > { %v3036_v12 = vmax.f32 %v3035_v43, %v2863_v22  ;;  %v3057_v34 = vmax.f32 %v3056_v40, %v2895_v54 }
 0x42a   : > { %v2864_v59 = vpop.trf.xlu0  ;;  %v2896_v18 = vpop.trf.xlu1 }
 0x42b   : > { %v3037_v15 = vmax.f32 %v3036_v12, %v2864_v59  ;;  %v3058_v47 = vmax.f32 %v3057_v34, %v2896_v18 }
 0x42e   : > { %v2865_v0 = vpop.trf.xlu0  ;;  %v2897_v31 = vpop.trf.xlu1 }
 0x42f   : > { %v3038_v55 = vmax.f32 %v3037_v15, %v2865_v0  ;;  %v3059_v62 = vmax.f32 %v3058_v47, %v2897_v31 }
 0x432   : > { %v2866_v8 = vpop.trf.xlu0  ;;  %v2898_v2 = vpop.trf.xlu1 }
 0x433   : > { %v3039_v4 = vmax.f32 %v3038_v55, %v2866_v8  ;;  %v3060_v17 = vmax.f32 %v3059_v62, %v2898_v2 }
 0x436   : > { %v2867_v14 = vpop.trf.xlu0  ;;  %v2899_v51 = vpop.trf.xlu1 }
 0x437   : > { %v3040_v1 = vmax.f32 %v3039_v4, %v2867_v14  ;;  %v3061_v5 = vmax.f32 %v3060_v17, %v2899_v51 }
 0x43a   : > { %v2868_v16 = vpop.trf.xlu0  ;;  %v2900_v37 = vpop.trf.xlu1 }
 0x43b   : > { %v3041_v53 = vmax.f32 %v3040_v1, %v2868_v16  ;;  %v3062_v60 = vmax.f32 %v3061_v5, %v2900_v37 }
 0x43e   : > { %v2869_v10 = vpop.trf.xlu0  ;;  %v2901_v11 = vpop.trf.xlu1 }
 0x43f   : > { %v3042_v21 = vmax.f32 %v3041_v53, %v2869_v10  ;;  %v3063_v35 = vmax.f32 %v3062_v60, %v2901_v11 }
 0x442   : > { %v2870_v26 = vpop.trf.xlu0  ;;  %v2902_v19 = vpop.trf.xlu1 }
 0x443   : > { %v3043_v27 = vmax.f32 %v3042_v21, %v2870_v26  ;;  %v3064_v3 = vmax.f32 %v3063_v35, %v2902_v19 }
 0x445   : > { %v3044_v28 = vrot.slane %v3043_v27, 4  ;;  %v3065_v38 = vrot.slane %v3064_v3, 4 }
 0x447   : > { %v3045_v29 = vmax.f32 %v3043_v27, %v3044_v28  ;;  %v3066_v24 = vmax.f32 %v3064_v3, %v3065_v38 }
 0x449   : > { %v3046_v30 = vrot.slane %v3045_v29, 2  ;;  %v3067_v42 = vrot.slane %v3066_v24, 2 }
 0x44b   : > { %v3047_v25 = vmax.f32 %v3045_v29, %v3046_v30  ;;  %v3068_v58 = vmax.f32 %v3066_v24, %v3067_v42 }
 0x44d   : > { %v3048_v41 = vrot.slane %v3047_v25, 1  ;;  %v3069_v22 = vrot.slane %v3068_v58, 1 }
 0x44f   : > { %v3049_v54 = vmax.f32 %v3047_v25, %v3048_v41  ;;  %v3070_v36 = vmax.f32 %v3068_v58, %v3069_v22 }
 0x451   : > { %v3119_v45 = vadd.f32 %v3100_v23, %v3049_v54  ;;  %v3120_v50 = vadd.f32 %v3104_v32, %v3070_v36 }
 0x453   : > { %v3127_v57 = vmax.f32 %v3119_v45, 0.0  ;;  %v3128_v59 = vmax.f32 %v3120_v50, 0.0 }
 0x455   : > { %v3140_v18 = vcombine.low %v3127_v57, %v3128_v59 }
 0x457   : > { %v3168_v52 = vrot.slane %v3140_v18, %v4542_v13 }
 0x459   : > { %v3170_v61 = vcombine.low %v3161_v44, %v3168_v52 }
 0x45b   : > { %v3184_v63 = vrot.slane %v3170_v61, %v4542_v13 }
 0x45d   : > { %v3185_v46 = vcombine.low %v3177_v56, %v3184_v63 }
 0x45f   : > { %3187 = vst [vmem:[%s304_s23] sm:$0xff] %v3185_v46 }
 0x460   : > { %3918 = shalt.err (!%p3915_p3)
}
 0x461   : > { %s3919_s19 = scalar_lea.hbm %s3201_s12, 128  ;;  %s3923_s22 = scalar_lea.hbm %s4610_s7, 256 }
 0x462   : > { %p3920_p5 = scmp.ne.s32.totalorder %s3201_s12, %s3919_s19  ;;  %p3924_p9 = scmp.lt.s32.totalorder %s3201_s12, %s4610_s7 }
 0x463   : > { %p3925_p10 = scmp.lt.s32.totalorder %s3923_s22, %s3919_s19 }
 0x464   : > { %p3921_p6 = pnand %p3920_p5, %p4075_p4 }
 0x465   : > { %p3926_p11 = por %p3925_p10, %p3924_p9 }
 0x466   : > { %p3922_p7 = pneg %p3921_p6 }
 0x468   : > { %p3927_p12 = pnand %p3926_p11, %p3922_p7 }
 0x46a   : > { %3930 = shalt.err (!%p3927_p12)
}
 0x46b   : > { %3724 = dma.vmem_to_hbm [thread:$0]  (%p4075_p4), %s3204_s30, 128, %s3201_s12, %s3189_s15  }
 0x46c PF: > { %p3736_p13 = scmp.ge.s32.totalorder %s3985_s29, 2  ;;  %s3215_s10 = sand.u32 1, %s3965_s24  }
 0x46d   : > { %s3216_s17 = scalar_lea.sflag [#allocation5], %s3215_s10 }
 0x46e   : > { %p3731_p0 = pnand %p3736_p13, %p4082_p8 }
 0x470   : > { %p3732_p1 = pneg %p3731_p0 }
 0x472   : > { %3960 = dma.done.wait (%p3732_p1), %s3216_s17, 128  }
 0x473   : > { %3962 = vsyncadd (%p3732_p1), %s3216_s17, 4294967168  ;;  %s21_s29 = sadd.s32 1, %s3985_s29   ;;  %s4615_s24 = smov %s3969_s25 }
 0x474   : > { %p18_p2 = scmp.ge.s32.totalorder %s21_s29, 4   ;;  %s4616_s25 = smov %s3973_s26 }
 0x475   : > { %s4617_s26 = smov %s4088_s14  ;;  %s4618_s27 = smov %s3981_s28 }
 0x476   : > { %s4619_s28 = smov %s4621_s9  ;;  %20 = sbr.rel (!%p18_p2) target bundleno = 5 (0x5), region = 96 }
 0x47b   :  { %3221 = vsyncpa [#allocation4], 1 }
 0x47c   :  { %3223 = vsyncpa [#allocation4 + $0x1], 1 }
 0x47d   :  { %3224 = vsyncpa [#allocation5], 1 }
 0x47e   :  { %3226 = vsyncpa [#allocation5 + $0x1], 1 }

</bundles_post_ra>
